<compile_context>
chip_gen: v5e
topology: v5e:2x2
jax: 0.10.0
libtpu: 0.0.40
codegen_flags: <defaults>
</compile_context>

<pallas_src>
import functools

import jax
import jax.numpy as jnp
from jax.experimental import pallas as pl
from jax.experimental.pallas import tpu as pltpu

LANE = 128  # feature dims are zero-padded to multiples of the lane width.


def _round_up(x, m):
    return (x + m - 1) // m * m


# ----------------------------------------------------------------------------
# Kernel
# ----------------------------------------------------------------------------
def _make_nbeats_mlp_kernel(num_linears, relu_after):
    """Kernel computing the whole MLP chain on one (tile_b, input_size) tile.

    refs layout: (x, w0, b0, w1, b1, ..., w_{L-1}, b_{L-1}, theta)
    relu_after: set of linear indices after which ReLU is applied
                (the Linears coming from `mlp_units`; none after the first
                Linear, none after the output Linear -- matches the module).
    """

    def kernel(*refs):
        x_ref = refs[0]
        theta_ref = refs[-1]

        h = x_ref[...].astype(jnp.bfloat16)             # (tile_b, input_size)
        for li in range(num_linears):
            w = refs[1 + 2 * li][...]                   # bf16 (in[_pad], out_pad), resident
            b = refs[2 + 2 * li][...]                   # f32  (1, out_pad), resident
            # bf16 x bf16 -> f32 accumulation on the MXU.
            acc = jnp.dot(h, w, preferred_element_type=jnp.float32) + b
            if li in relu_after:
                acc = jnp.maximum(acc, 0.0)             # activation='ReLU'
            # Keep the final theta in f32; re-quantize intermediates to bf16.
            h = acc.astype(jnp.bfloat16) if li < num_linears - 1 else acc

        # Single lane-dense (tile_b, theta_pad) store; IdentityBasis split
        # (backcast / forecast) happens in the wrapper on HBM.
        theta_ref[...] = h.astype(theta_ref.dtype)

    return kernel


# ----------------------------------------------------------------------------
# Parameter init (mirrors the PyTorch layer structure; weights stored (in,out))
# ----------------------------------------------------------------------------
def init_nbeats_params(key, input_size, mlp_units, n_theta, dtype=jnp.float32):
    dims = [(input_size, mlp_units[0][0])]
    for u in mlp_units:
        dims.append((u[0], u[1]))
    dims.append((mlp_units[-1][1], n_theta))

    params = []
    for (fan_in, fan_out) in dims:
        key, kw, kb = jax.random.split(key, 3)
        bound = 1.0 / jnp.sqrt(jnp.float32(fan_in))
        w = jax.random.uniform(kw, (fan_in, fan_out), dtype, -bound, bound)
        b = jax.random.uniform(kb, (1, fan_out), dtype, -bound, bound)
        params.append((w, b))
    return params


def _pad_params(params):
    """Zero-pad weights/biases to 128-lane multiples; weights -> bf16.

    The first layer's in-dim is kept at its true size (the raw input is
    streamed unpadded; the first matmul runs with K=input_size).  All output
    dims (and subsequent input dims) are padded to lane multiples; padded
    rows/cols are zero so real outputs are exact.
    """
    padded = []
    for li, (w, b) in enumerate(params):
        fi, fo = w.shape
        fi_p = fi if li == 0 else _round_up(fi, LANE)
        fo_p = _round_up(fo, LANE)
        wp = jnp.zeros((fi_p, fo_p), jnp.bfloat16).at[:fi, :fo].set(
            w.astype(jnp.bfloat16))
        bp = jnp.zeros((1, fo_p), jnp.float32).at[:, :fo].set(
            b.astype(jnp.float32))
        padded.append((wp, bp))
    return padded


# ----------------------------------------------------------------------------
# Wrapper (pallas_call + IdentityBasis split)
# ----------------------------------------------------------------------------
@functools.partial(jax.jit, static_argnames=("input_size", "n_theta", "tile_b"))
def nbeats_block_forward(insample_y, params, *, input_size, n_theta, tile_b=512):
    """Runs the N-BEATS block. Returns (backcast, forecast)."""
    B = insample_y.shape[0]
    horizon = n_theta - input_size
    num_linears = len(params)
    # ReLU after every Linear that comes from `mlp_units`
    # (i.e. not after the very first Linear and not after the output Linear).
    relu_after = frozenset(range(1, num_linears - 1))

    theta_pad = _round_up(n_theta, LANE)

    # Stream the raw input: only pad the batch dim when it is not already a
    # multiple of tile_b (padded rows are zero and sliced away afterwards).
    if B % tile_b != 0:
        b_pad = _round_up(B, tile_b)
        x = jnp.zeros((b_pad, input_size), insample_y.dtype).at[:B].set(insample_y)
    else:
        b_pad = B
        x = insample_y

    padded_params = _pad_params(params)

    flat_inputs = [x]
    # Input block: last dim equals the full array dim -> allowed un-tiled.
    in_specs = [pl.BlockSpec((tile_b, input_size), lambda i: (i, 0))]
    for w, b in padded_params:
        flat_inputs.extend([w, b])
        # Constant block index -> weights/biases stay VMEM-resident.
        in_specs.append(pl.BlockSpec(w.shape, lambda i: (0, 0)))
        in_specs.append(pl.BlockSpec(b.shape, lambda i: (0, 0)))

    out_dtype = insample_y.dtype
    kernel = _make_nbeats_mlp_kernel(num_linears, relu_after)

    theta = pl.pallas_call(
        kernel,
        out_shape=jax.ShapeDtypeStruct((b_pad, theta_pad), out_dtype),
        grid_spec=pltpu.PrefetchScalarGridSpec(
            num_scalar_prefetch=0,
            grid=(b_pad // tile_b,),
            in_specs=in_specs,
            out_specs=pl.BlockSpec((tile_b, theta_pad), lambda i: (i, 0)),
        ),
        compiler_params=pltpu.CompilerParams(
            # Batch tiles are independent -> shard across v7x's 2 TCs.
            dimension_semantics=("parallel",),
            # Working set (double-buffered input/theta tiles + resident
            # weights + f32 intermediates) is < 2 MiB at tile_b=512; 8 MiB is
            # safe on every generation and leaves scoped-VMEM headroom.
            vmem_limit_bytes=8 * 1024 * 1024,
        ),
    )(*flat_inputs)

    # IdentityBasis: backcast = theta[:, :input_size], forecast = the rest.
    backcast = theta[:B, :input_size]
    forecast = theta[:B, input_size:n_theta]
    return backcast, forecast


# ----------------------------------------------------------------------------
# Pure-JAX reference (same bf16-input / f32-accumulate recipe) for checking
# ----------------------------------------------------------------------------
def nbeats_block_reference(insample_y, params, input_size):
    num_linears = len(params)
    relu_after = set(range(1, num_linears - 1))
    h = insample_y.astype(jnp.bfloat16)
    for li, (w, b) in enumerate(params):
        acc = jnp.dot(h, w.astype(jnp.bfloat16),
                      preferred_element_type=jnp.float32) + b.astype(jnp.float32)
        if li in relu_after:
            acc = jnp.maximum(acc, 0.0)
        h = acc.astype(jnp.bfloat16) if li < num_linears - 1 else acc
    back = h[:, :input_size].astype(insample_y.dtype)
    fore = h[:, input_size:].astype(insample_y.dtype)
    return back, fore


if __name__ == "__main__":
    # Shapes consistent with the module.  batch=1024 with tile_b=512 gives an
    # even 2-step batch grid (load-balanced across v7x's 2 TensorCores) while
    # staying small (1024 x 32 f32 = 128 KiB of input).
    batch = 1024
    input_size = 32          # backcast length (MLP input features)
    horizon = 16             # forecast length
    n_theta = input_size + horizon
    mlp_units = [[64, 64], [64, 64]]
    # dropout_prob = 0.0 (dropout > 0 raises NotImplementedError in the module)
    # activation = 'ReLU'

    key = jax.random.PRNGKey(0)
    k_x, k_p = jax.random.split(key)
    insample_y = jax.random.normal(k_x, (batch, input_size), jnp.float32)
    params = init_nbeats_params(k_p, input_size, mlp_units, n_theta)

    backcast, forecast = nbeats_block_forward(
        insample_y, params, input_size=input_size, n_theta=n_theta, tile_b=512)
    jax.block_until_ready((backcast, forecast))

    # Verify against a plain-JAX reference using the same bf16 matmul recipe.
    ref_back, ref_fore = nbeats_block_reference(insample_y, params, input_size)
    assert backcast.shape == (batch, input_size)
    assert forecast.shape == (batch, horizon)
    assert jnp.allclose(backcast, ref_back, atol=2e-3, rtol=2e-3), \
        float(jnp.max(jnp.abs(backcast - ref_back)))
    assert jnp.allclose(forecast, ref_fore, atol=2e-3, rtol=2e-3), \
        float(jnp.max(jnp.abs(forecast - ref_fore)))

    print("KERNEL_OK")
</pallas_src>

<mosaic_0001>
module attributes {stable_mosaic.version = 11 : i64} {
  func.func @kernel(%arg0: i32, %arg1: memref<512x32xf32, #tpu.memory_space<vmem>>, %arg2: memref<32x128xbf16, #tpu.memory_space<vmem>>, %arg3: memref<1x128xf32, #tpu.memory_space<vmem>>, %arg4: memref<128x128xbf16, #tpu.memory_space<vmem>>, %arg5: memref<1x128xf32, #tpu.memory_space<vmem>>, %arg6: memref<128x128xbf16, #tpu.memory_space<vmem>>, %arg7: memref<1x128xf32, #tpu.memory_space<vmem>>, %arg8: memref<128x128xbf16, #tpu.memory_space<vmem>>, %arg9: memref<1x128xf32, #tpu.memory_space<vmem>>, %arg10: memref<512x128xf32, #tpu.memory_space<vmem>>) attributes {dimension_semantics = [#tpu.dimension_semantics<parallel>], iteration_bounds = array<i64: 2>, scalar_prefetch = 0 : i64, scratch_operands = 0 : i64, tpu.core_type = #tpu.core_type<tc>, window_params = [{transform_indices = @transform_0, window_bounds = array<i64: 512, 32>}, {pipeline_mode = #tpu.pipeline_mode<synchronous>, transform_indices = @transform_1, window_bounds = array<i64: 32, 128>}, {pipeline_mode = #tpu.pipeline_mode<synchronous>, transform_indices = @transform_2, window_bounds = array<i64: 1, 128>}, {pipeline_mode = #tpu.pipeline_mode<synchronous>, transform_indices = @transform_3, window_bounds = array<i64: 128, 128>}, {pipeline_mode = #tpu.pipeline_mode<synchronous>, transform_indices = @transform_4, window_bounds = array<i64: 1, 128>}, {pipeline_mode = #tpu.pipeline_mode<synchronous>, transform_indices = @transform_5, window_bounds = array<i64: 128, 128>}, {pipeline_mode = #tpu.pipeline_mode<synchronous>, transform_indices = @transform_6, window_bounds = array<i64: 1, 128>}, {pipeline_mode = #tpu.pipeline_mode<synchronous>, transform_indices = @transform_7, window_bounds = array<i64: 128, 128>}, {pipeline_mode = #tpu.pipeline_mode<synchronous>, transform_indices = @transform_8, window_bounds = array<i64: 1, 128>}, {transform_indices = @transform_9, window_bounds = array<i64: 512, 128>}]} {
    %c0 = arith.constant 0 : index
    %c0_0 = arith.constant 0 : index
    %0 = vector.load %arg1[%c0, %c0_0] : memref<512x32xf32, #tpu.memory_space<vmem>>, vector<512x32xf32>
    %1 = arith.truncf %0 : vector<512x32xf32> to vector<512x32xbf16>
    %c0_1 = arith.constant 0 : index
    %c0_2 = arith.constant 0 : index
    %2 = vector.load %arg2[%c0_1, %c0_2] : memref<32x128xbf16, #tpu.memory_space<vmem>>, vector<32x128xbf16>
    %c0_3 = arith.constant 0 : index
    %c0_4 = arith.constant 0 : index
    %3 = vector.load %arg3[%c0_3, %c0_4] : memref<1x128xf32, #tpu.memory_space<vmem>>, vector<1x128xf32>
    %cst = arith.constant dense<0.000000e+00> : vector<512x128xf32>
    %4 = tpu.matmul %1, %2, %cst {dimension_numbers = #tpu.dot_dimension_numbers<[1], [0], [0], [1], [0, 0, 1, 1], [], []>} : vector<512x32xbf16>, vector<32x128xbf16>, vector<512x128xf32> -> vector<512x128xf32>
    %5 = vector.broadcast %3 : vector<1x128xf32> to vector<512x128xf32>
    %6 = arith.addf %4, %5 : vector<512x128xf32>
    %7 = arith.truncf %6 : vector<512x128xf32> to vector<512x128xbf16>
    %c0_5 = arith.constant 0 : index
    %c0_6 = arith.constant 0 : index
    %8 = vector.load %arg4[%c0_5, %c0_6] : memref<128x128xbf16, #tpu.memory_space<vmem>>, vector<128x128xbf16>
    %c0_7 = arith.constant 0 : index
    %c0_8 = arith.constant 0 : index
    %9 = vector.load %arg5[%c0_7, %c0_8] : memref<1x128xf32, #tpu.memory_space<vmem>>, vector<1x128xf32>
    %cst_9 = arith.constant dense<0.000000e+00> : vector<512x128xf32>
    %10 = tpu.matmul %7, %8, %cst_9 {dimension_numbers = #tpu.dot_dimension_numbers<[1], [0], [0], [1], [0, 0, 1, 1], [], []>} : vector<512x128xbf16>, vector<128x128xbf16>, vector<512x128xf32> -> vector<512x128xf32>
    %11 = vector.broadcast %9 : vector<1x128xf32> to vector<512x128xf32>
    %12 = arith.addf %10, %11 : vector<512x128xf32>
    %cst_10 = arith.constant 0.000000e+00 : f32
    %13 = vector.broadcast %cst_10 : f32 to vector<512x128xf32>
    %14 = arith.maximumf %12, %13 : vector<512x128xf32>
    %15 = arith.truncf %14 : vector<512x128xf32> to vector<512x128xbf16>
    %c0_11 = arith.constant 0 : index
    %c0_12 = arith.constant 0 : index
    %16 = vector.load %arg6[%c0_11, %c0_12] : memref<128x128xbf16, #tpu.memory_space<vmem>>, vector<128x128xbf16>
    %c0_13 = arith.constant 0 : index
    %c0_14 = arith.constant 0 : index
    %17 = vector.load %arg7[%c0_13, %c0_14] : memref<1x128xf32, #tpu.memory_space<vmem>>, vector<1x128xf32>
    %cst_15 = arith.constant dense<0.000000e+00> : vector<512x128xf32>
    %18 = tpu.matmul %15, %16, %cst_15 {dimension_numbers = #tpu.dot_dimension_numbers<[1], [0], [0], [1], [0, 0, 1, 1], [], []>} : vector<512x128xbf16>, vector<128x128xbf16>, vector<512x128xf32> -> vector<512x128xf32>
    %19 = vector.broadcast %17 : vector<1x128xf32> to vector<512x128xf32>
    %20 = arith.addf %18, %19 : vector<512x128xf32>
    %cst_16 = arith.constant 0.000000e+00 : f32
    %21 = vector.broadcast %cst_16 : f32 to vector<512x128xf32>
    %22 = arith.maximumf %20, %21 : vector<512x128xf32>
    %23 = arith.truncf %22 : vector<512x128xf32> to vector<512x128xbf16>
    %c0_17 = arith.constant 0 : index
    %c0_18 = arith.constant 0 : index
    %24 = vector.load %arg8[%c0_17, %c0_18] : memref<128x128xbf16, #tpu.memory_space<vmem>>, vector<128x128xbf16>
    %c0_19 = arith.constant 0 : index
    %c0_20 = arith.constant 0 : index
    %25 = vector.load %arg9[%c0_19, %c0_20] : memref<1x128xf32, #tpu.memory_space<vmem>>, vector<1x128xf32>
    %cst_21 = arith.constant dense<0.000000e+00> : vector<512x128xf32>
    %26 = tpu.matmul %23, %24, %cst_21 {dimension_numbers = #tpu.dot_dimension_numbers<[1], [0], [0], [1], [0, 0, 1, 1], [], []>} : vector<512x128xbf16>, vector<128x128xbf16>, vector<512x128xf32> -> vector<512x128xf32>
    %27 = vector.broadcast %25 : vector<1x128xf32> to vector<512x128xf32>
    %28 = arith.addf %26, %27 : vector<512x128xf32>
    %c0_22 = arith.constant 0 : index
    %c0_23 = arith.constant 0 : index
    %29 = vector.load %arg10[%c0_22, %c0_23] : memref<512x128xf32, #tpu.memory_space<vmem>>, vector<512x128xf32>
    tpu.vector_store %arg10[%c0_22, %c0_23], %28 {strides = array<i32>} : memref<512x128xf32, #tpu.memory_space<vmem>>, vector<512x128xf32>,
    return
  }
  func.func @transform_0(%arg0: i32) -> (i32, i32) {
    %c0_i32 = arith.constant 0 : i32
    %c0_i32_0 = arith.constant 0 : i32
    return %arg0, %c0_i32 : i32, i32
  }
  func.func @transform_1(%arg0: i32) -> (i32, i32) {
    %c0_i32 = arith.constant 0 : i32
    %c0_i32_0 = arith.constant 0 : i32
    %c0_i32_1 = arith.constant 0 : i32
    return %c0_i32, %c0_i32_0 : i32, i32
  }
  func.func @transform_2(%arg0: i32) -> (i32, i32) {
    %c0_i32 = arith.constant 0 : i32
    %c0_i32_0 = arith.constant 0 : i32
    %c0_i32_1 = arith.constant 0 : i32
    return %c0_i32, %c0_i32_0 : i32, i32
  }
  func.func @transform_3(%arg0: i32) -> (i32, i32) {
    %c0_i32 = arith.constant 0 : i32
    %c0_i32_0 = arith.constant 0 : i32
    %c0_i32_1 = arith.constant 0 : i32
    return %c0_i32, %c0_i32_0 : i32, i32
  }
  func.func @transform_4(%arg0: i32) -> (i32, i32) {
    %c0_i32 = arith.constant 0 : i32
    %c0_i32_0 = arith.constant 0 : i32
    %c0_i32_1 = arith.constant 0 : i32
    return %c0_i32, %c0_i32_0 : i32, i32
  }
  func.func @transform_5(%arg0: i32) -> (i32, i32) {
    %c0_i32 = arith.constant 0 : i32
    %c0_i32_0 = arith.constant 0 : i32
    %c0_i32_1 = arith.constant 0 : i32
    return %c0_i32, %c0_i32_0 : i32, i32
  }
  func.func @transform_6(%arg0: i32) -> (i32, i32) {
    %c0_i32 = arith.constant 0 : i32
    %c0_i32_0 = arith.constant 0 : i32
    %c0_i32_1 = arith.constant 0 : i32
    return %c0_i32, %c0_i32_0 : i32, i32
  }
  func.func @transform_7(%arg0: i32) -> (i32, i32) {
    %c0_i32 = arith.constant 0 : i32
    %c0_i32_0 = arith.constant 0 : i32
    %c0_i32_1 = arith.constant 0 : i32
    return %c0_i32, %c0_i32_0 : i32, i32
  }
  func.func @transform_8(%arg0: i32) -> (i32, i32) {
    %c0_i32 = arith.constant 0 : i32
    %c0_i32_0 = arith.constant 0 : i32
    %c0_i32_1 = arith.constant 0 : i32
    return %c0_i32, %c0_i32_0 : i32, i32
  }
  func.func @transform_9(%arg0: i32) -> (i32, i32) {
    %c0_i32 = arith.constant 0 : i32
    %c0_i32_0 = arith.constant 0 : i32
    return %arg0, %c0_i32 : i32, i32
  }
}

</mosaic_0001>

<bundles_post_ra>
// kernel: nbeats_block_forward.1
= control target key start
LH: loop header
LB: loop body
LE: loop exit
PB: predicated region body
PF: predicated region fallthrough
CT: control target
= control target key end

     0   :  { %s2021_s30 = smov 0   ;;  %s2578_s0 = inlined_call_operand.vmem [shape: f32[1024,32], index: 0, kind: input, shape index: {}]   ;;  %s2579_s1 = inlined_call_operand.vmem [shape: bf16[32,128], index: 1, kind: input, shape index: {}]   ;;  %s2580_s2 = inlined_call_operand.vmem [shape: f32[1,128], index: 2, kind: input, shape index: {}]   ;;  %s2581_s3 = inlined_call_operand.vmem [shape: bf16[128,128], index: 3, kind: input, shape index: {}]   ;;  %s2582_s4 = inlined_call_operand.vmem [shape: f32[1,128], index: 4, kind: input, shape index: {}]   ;;  %s2583_s5 = inlined_call_operand.vmem [shape: bf16[128,128], index: 5, kind: input, shape index: {}]   ;;  %s2584_s6 = inlined_call_operand.vmem [shape: f32[1,128], index: 6, kind: input, shape index: {}]   ;;  %s2585_s7 = inlined_call_operand.vmem [shape: bf16[128,128], index: 7, kind: input, shape index: {}]   ;;  %s2586_s8 = inlined_call_operand.vmem [shape: f32[1,128], index: 8, kind: input, shape index: {}]   ;;  %s2587_s9 = inlined_call_operand.vmem [shape: f32[1024,128], index: 9, kind: output, shape index: {}]  }
   0x1 LB: > { %s1774_s10 = sadd.s32 4294967295, %s1969_s30   ;;  %p1778_p0 = scmp.ge.s32.totalorder %s1969_s30, 1  ;;  %s1969_s30 = sphi %s2021_s30, %s19_s30  }
   0x2   : > { %p288_p1 = scmp.lt.s32.totalorder %s1969_s30, 3 }
   0x4   : > { %p289_p2 = pnand %p1778_p0, %p288_p1 }
   0x5   : > { %s1779_s13 = sshll.u32 (!%p289_p2), %s1774_s10, 6 }
   0x6   : > { %292 = sbr.rel (%p289_p2) target bundleno = 1082 (0x43a), region = 56  ;;  %p325_p3 = scmp.lt.s32.totalorder (!%p289_p2), %s1779_s13, 127 }
   0xb   : > { %v1922_v0 = vld [vmem:[%s2579_s1 + $0x8] sm:$0xff]  ;;  %v1921_v1 = vld [vmem:[%s2579_s1] sm:$0xff]  ;;  %s2589_s13 = smov (!%p325_p3, %s1779_s13), 127  ;;  %vm453_vm0 = vcmask 261120   ;;  %v1930_v17 = vld [vmem:[%s2581_s3 + $0x38] sm:$0xff] }
   0xc   : > { %556 = vmatpush.bf16.msra.mxu0 %v1922_v0  ;;  %s1780_s16 = sshll.u32 %s2589_s13, 3  ;;  %819 = vmatpush.bf16.msra.mxu1 %v1930_v17  ;;  %v1929_v18 = vld [vmem:[%s2581_s3 + $0x30] sm:$0xff]  ;;  %v1928_v22 = vld [vmem:[%s2581_s3 + $0x28] sm:$0xff]  ;;  %v1927_v23 = vld [vmem:[%s2581_s3 + $0x20] sm:$0xff] }
   0xd   : > { %s2043_s19 = scalar_lea.vmem %s2578_s0, %s1780_s16  ;;  %v1926_v24 = vld [vmem:[%s2581_s3 + $0x18] sm:$0xff]  ;;  %v1925_v28 = vld [vmem:[%s2581_s3 + $0x10] sm:$0xff]  ;;  %v1924_v29 = vld [vmem:[%s2581_s3 + $0x8] sm:$0xff]  ;;  %s2346_s26 = scalar_lea.vmem %s2587_s9, %s1780_s16 }
   0xe   : > { %v337_v2 = vld [vmem:[%s2043_s19] sm:$0xff]  ;;  %v338_v3 = vld [vmem:[%s2043_s19 + $0x8] sm:$0xff]  ;;  %v339_v5 = vld [vmem:[%s2043_s19 + $0x10] sm:$0xff] }
   0xf   : > { %v401_v4 = vpack.c.bf16 %v338_v3, %v337_v2  ;;  %v340_v6 = vld [vmem:[%s2043_s19 + $0x18] sm:$0xff]  ;;  %v341_v8 = vld [vmem:[%s2043_s19 + $0x20] sm:$0xff]  ;;  %v342_v9 = vld [vmem:[%s2043_s19 + $0x28] sm:$0xff] }
  0x10   : > { %557 = vmatpush.bf16.msra.mxu0 %v1921_v1  ;;  %v402_v7 = vpack.c.bf16 %v340_v6, %v339_v5  ;;  %v403_v10 = vpack.c.bf16 %v342_v9, %v341_v8  ;;  %v343_v11 = vld [vmem:[%s2043_s19 + $0x30] sm:$0xff]  ;;  %v344_v12 = vld [vmem:[%s2043_s19 + $0x38] sm:$0xff]  ;;  %v345_v14 = vld [vmem:[%s2043_s19 + $0x40] sm:$0xff]  ;;  %820 = vmatpush.bf16.msra.mxu1 %v1929_v18 }
  0x11   : > { %v404_v13 = vpack.c.bf16 %v344_v12, %v343_v11  ;;  %v346_v15 = vld [vmem:[%s2043_s19 + $0x48] sm:$0xff]  ;;  %v347_v19 = vld [vmem:[%s2043_s19 + $0x50] sm:$0xff]  ;;  %v348_v20 = vld [vmem:[%s2043_s19 + $0x58] sm:$0xff] }
  0x12   : > { %v405_v16 = vpack.c.bf16 %v346_v15, %v345_v14  ;;  %v406_v21 = vpack.c.bf16 %v348_v20, %v347_v19  ;;  %v349_v25 = vld [vmem:[%s2043_s19 + $0x60] sm:$0xff]  ;;  %v350_v26 = vld [vmem:[%s2043_s19 + $0x68] sm:$0xff]  ;;  %v351_v31 = vld [vmem:[%s2043_s19 + $0x70] sm:$0xff] }
  0x13   : > { %1791 = vmatmul.msk.bf16.vlgmr.msra.gmra.mxu0 %vm453_vm0, %v401_v4  ;;  %v407_v27 = vpack.c.bf16 %v350_v26, %v349_v25  ;;  %v1923_v30 = vld [vmem:[%s2581_s3] sm:$0xff]  ;;  %v352_v32 = vld [vmem:[%s2043_s19 + $0x78] sm:$0xff]  ;;  %v354_v35 = vld [vmem:[%s2043_s19 + $0x88] sm:$0xff] }
  0x14   : > { %821 = vmatpush.bf16.msra.mxu1 %v1928_v22  ;;  %v408_v33 = vpack.c.bf16 %v352_v32, %v351_v31  ;;  %v353_v34 = vld [vmem:[%s2043_s19 + $0x80] sm:$0xff]  ;;  %v355_v43 = vld [vmem:[%s2043_s19 + $0x90] sm:$0xff]  ;;  %v356_v44 = vld [vmem:[%s2043_s19 + $0x98] sm:$0xff] }
  0x15   : > { %v409_v36 = vpack.c.bf16 %v354_v35, %v353_v34  ;;  %v2099_v38 = vld [vmem:[%s2580_s2] ss:$0 sm:$0xff]  ;;  %v410_v45 = vpack.c.bf16 %v356_v44, %v355_v43  ;;  %v358_v52 = vld [vmem:[%s2043_s19 + $0xa8] sm:$0xff]  ;;  %v359_v59 = vld [vmem:[%s2043_s19 + $0xb0] sm:$0xff] }
  0x16   : > { %v357_v51 = vld [vmem:[%s2043_s19 + $0xa0] sm:$0xff]  ;;  %v360_v60 = vld [vmem:[%s2043_s19 + $0xb8] sm:$0xff]  ;;  %v362_v4 = vld [vmem:[%s2043_s19 + $0xc8] sm:$0xff] }
  0x17   : > { %v411_v53 = vpack.c.bf16 %v358_v52, %v357_v51  ;;  %v412_v61 = vpack.c.bf16 %v360_v60, %v359_v59  ;;  %v361_v3 = vld [vmem:[%s2043_s19 + $0xc0] sm:$0xff]  ;;  %v363_v11 = vld [vmem:[%s2043_s19 + $0xd0] sm:$0xff]  ;;  %v364_v12 = vld [vmem:[%s2043_s19 + $0xd8] sm:$0xff] }
  0x18   : > { %822 = vmatpush.bf16.msra.mxu1 %v1927_v23  ;;  %v413_v5 = vpack.c.bf16 %v362_v4, %v361_v3  ;;  %v365_v20 = vld [vmem:[%s2043_s19 + $0xe0] sm:$0xff]  ;;  %v1937_v22 = vld [vmem:[%s2583_s5 + $0x30] sm:$0xff]  ;;  %v1936_v25 = vld [vmem:[%s2583_s5 + $0x28] sm:$0xff] }
  0x19   : > { %v1935_v26 = vld [vmem:[%s2583_s5 + $0x20] sm:$0xff]  ;;  %v367_v32 = vld [vmem:[%s2043_s19 + $0xf0] sm:$0xff] }
  0x1a   : > { %v1933_v34 = vld [vmem:[%s2583_s5 + $0x10] sm:$0xff]  ;;  %v369_v44 = vld [vmem:[%s2043_s19 + $0x100] sm:$0xff] }
  0x1c   : > { %823 = vmatpush.bf16.msra.mxu1 %v1926_v24 }
  0x20   : > { %824 = vmatpush.bf16.msra.mxu1 %v1925_v28  ;;  %v1934_v28 = vld [vmem:[%s2583_s5 + $0x18] sm:$0xff] }
  0x23   : > { %1792 = vmatmul.msk.bf16.gmra.mxu0 %vm453_vm0, %v402_v7 }
  0x24   : > { %825 = vmatpush.bf16.msra.mxu1 %v1924_v29 }
  0x28   : > { %826 = vmatpush.bf16.msra.mxu1 %v1923_v30 }
  0x33   : > { %1793 = vmatmul.msk.bf16.gmra.mxu0 %vm453_vm0, %v403_v10 }
  0x43   : > { %1794 = vmatmul.msk.bf16.gmra.mxu0 %vm453_vm0, %v404_v13  ;;  %v414_v13 = vpack.c.bf16 %v364_v12, %v363_v11 }
  0x53   : > { %1795 = vmatmul.msk.bf16.gmra.mxu0 %vm453_vm0, %v405_v16  ;;  %v1938_v16 = vld [vmem:[%s2583_s5 + $0x38] sm:$0xff] }
  0x54   : > { %1152 = vmatpush.bf16.msra.mxu2 %v1938_v16 }
  0x58   : > { %1153 = vmatpush.bf16.msra.mxu2 %v1937_v22 }
  0x5c   : > { %1154 = vmatpush.bf16.msra.mxu2 %v1936_v25 }
  0x60   : > { %1155 = vmatpush.bf16.msra.mxu2 %v1935_v26 }
  0x63   : > { %1796 = vmatmul.msk.bf16.gmra.mxu0 %vm453_vm0, %v406_v21  ;;  %v366_v21 = vld [vmem:[%s2043_s19 + $0xe8] sm:$0xff] }
  0x64   : > { %v415_v23 = vpack.c.bf16 %v366_v21, %v365_v20  ;;  %1156 = vmatpush.bf16.msra.mxu2 %v1934_v28  ;;  %v375_v20 = vld [vmem:[%s2043_s19 + $0x130] sm:$0xff]  ;;  %v376_v21 = vld [vmem:[%s2043_s19 + $0x138] sm:$0xff] }
  0x65   : > { %v420_v22 = vpack.c.bf16 %v376_v21, %v375_v20  ;;  %v384_v20 = vld [vmem:[%s2043_s19 + $0x178] sm:$0xff]  ;;  %v1945_v21 = vld [vmem:[%s2585_s7 + $0x30] sm:$0xff] }
  0x68   : > { %1157 = vmatpush.bf16.msra.mxu2 %v1933_v34 }
  0x73   : > { %1797 = vmatmul.msk.bf16.gmra.mxu0 %vm453_vm0, %v407_v27 }
  0x83   : > { %1798 = vmatmul.msk.bf16.gmra.mxu0 %vm453_vm0, %v408_v33  ;;  %v368_v33 = vld [vmem:[%s2043_s19 + $0xf8] sm:$0xff] }
  0x84   : > { %v416_v35 = vpack.c.bf16 %v368_v33, %v367_v32 }
  0x90   : > { %v559_v37 = vpop.f32.mrf.mxu0 }
  0x91   : > { %v560_v40 = vadd.f32 %v2099_v38, %v559_v37  ;;  %v1932_v37 = vld [vmem:[%s2583_s5 + $0x8] sm:$0xff] }
  0x92   : > { %1158 = vmatpush.bf16.msra.mxu2 %v1932_v37 }
  0x93   : > { %1799 = vmatmul.msk.bf16.gmra.mxu0 %vm453_vm0, %v409_v36 }
  0x98   : > { %v561_v39 = vpop.f32.mrf.mxu0 }
  0x99   : > { %v562_v41 = vadd.f32 %v2099_v38, %v561_v39  ;;  %v1931_v39 = vld [vmem:[%s2583_s5] sm:$0xff] }
  0x9a   : > { %1159 = vmatpush.bf16.msra.mxu2 %v1931_v39 }
  0x9b   : > { %v719_v42 = vpack.c.bf16 %v562_v41, %v560_v40 }
  0x9d   : > { %827 = vmatmul.bf16.vlgmr.msra.gmra.mxu1 %v719_v42 }
  0xa0   : > { %v564_v46 = vpop.f32.mrf.mxu0 }
  0xa1   : > { %v565_v48 = vadd.f32 %v2099_v38, %v564_v46 }
  0xa3   : > { %1800 = vmatmul.msk.bf16.gmra.mxu0 %vm453_vm0, %v410_v45  ;;  %v370_v45 = vld [vmem:[%s2043_s19 + $0x108] sm:$0xff] }
  0xa4   : > { %v417_v46 = vpack.c.bf16 %v370_v45, %v369_v44 }
  0xa8   : > { %v566_v47 = vpop.f32.mrf.mxu0 }
  0xa9   : > { %v567_v49 = vadd.f32 %v2099_v38, %v566_v47 }
  0xab   : > { %v720_v50 = vpack.c.bf16 %v567_v49, %v565_v48 }
  0xad   : > { %832 = vmatmul.bf16.gmra.mxu1 %v720_v50 }
  0xb0   : > { %v569_v54 = vpop.f32.mrf.mxu0 }
  0xb1   : > { %v570_v56 = vadd.f32 %v2099_v38, %v569_v54  ;;  %v372_v54 = vld [vmem:[%s2043_s19 + $0x118] sm:$0xff] }
  0xb3   : > { %1801 = vmatmul.msk.bf16.gmra.mxu0 %vm453_vm0, %v411_v53  ;;  %v371_v53 = vld [vmem:[%s2043_s19 + $0x110] sm:$0xff] }
  0xb8   : > { %v571_v55 = vpop.f32.mrf.mxu0 }
  0xb9   : > { %v572_v57 = vadd.f32 %v2099_v38, %v571_v55  ;;  %v2172_v55 = vld [vmem:[%s2582_s4] ss:$0 sm:$0xff] }
  0xbb   : > { %v721_v58 = vpack.c.bf16 %v572_v57, %v570_v56  ;;  %v418_v56 = vpack.c.bf16 %v372_v54, %v371_v53 }
  0xbd   : > { %837 = vmatmul.bf16.gmra.mxu1 %v721_v58 }
  0xc0   : > { %v574_v62 = vpop.f32.mrf.mxu0 }
  0xc1   : > { %v575_v0 = vadd.f32 %v2099_v38, %v574_v62 }
  0xc3   : > { %1802 = vmatmul.msk.bf16.gmra.mxu0 %vm453_vm0, %v412_v61 }
  0xc8   : > { %v576_v63 = vpop.f32.mrf.mxu0 }
  0xc9   : > { %v577_v1 = vadd.f32 %v2099_v38, %v576_v63 }
  0xcb   : > { %v722_v2 = vpack.c.bf16 %v577_v1, %v575_v0 }
  0xcd   : > { %842 = vmatmul.bf16.gmra.mxu1 %v722_v2 }
  0xd0   : > { %v579_v6 = vpop.f32.mrf.mxu0 }
  0xd1   : > { %v580_v8 = vadd.f32 %v2099_v38, %v579_v6  ;;  %v374_v6 = vld [vmem:[%s2043_s19 + $0x128] sm:$0xff] }
  0xd3   : > { %1803 = vmatmul.msk.bf16.gmra.mxu0 %vm453_vm0, %v413_v5  ;;  %v373_v5 = vld [vmem:[%s2043_s19 + $0x120] sm:$0xff] }
  0xd8   : > { %v581_v7 = vpop.f32.mrf.mxu0 }
  0xd9   : > { %v582_v9 = vadd.f32 %v2099_v38, %v581_v7  ;;  %v419_v7 = vpack.c.bf16 %v374_v6, %v373_v5 }
  0xdb   : > { %v723_v10 = vpack.c.bf16 %v582_v9, %v580_v8 }
  0xdd   : > { %847 = vmatmul.bf16.gmra.mxu1 %v723_v10 }
  0xe0   : > { %v584_v14 = vpop.f32.mrf.mxu0 }
  0xe1   : > { %v585_v17 = vadd.f32 %v2099_v38, %v584_v14 }
  0xe3   : > { %1804 = vmatmul.msk.bf16.gmra.mxu0 %vm453_vm0, %v414_v13 }
  0xe8   : > { %v586_v15 = vpop.f32.mrf.mxu0 }
  0xe9   : > { %v587_v18 = vadd.f32 %v2099_v38, %v586_v15 }
  0xeb   : > { %v724_v19 = vpack.c.bf16 %v587_v18, %v585_v17 }
  0xed   : > { %852 = vmatmul.bf16.gmra.mxu1 %v724_v19 }
  0xf0   : > { %v589_v24 = vpop.f32.mrf.mxu0 }
  0xf1   : > { %v590_v29 = vadd.f32 %v2099_v38, %v589_v24 }
  0xf3   : > { %1805 = vmatmul.msk.bf16.gmra.mxu0 %vm453_vm0, %v415_v23 }
  0xf8   : > { %v591_v27 = vpop.f32.mrf.mxu0 }
  0xf9   : > { %v592_v30 = vadd.f32 %v2099_v38, %v591_v27 }
  0xfb   : > { %v725_v31 = vpack.c.bf16 %v592_v30, %v590_v29 }
  0xfd   : > { %857 = vmatmul.bf16.gmra.mxu1 %v725_v31 }
 0x100   : > { %v594_v36 = vpop.f32.mrf.mxu0 }
 0x101   : > { %v595_v41 = vadd.f32 %v2099_v38, %v594_v36  ;;  %v378_v36 = vld [vmem:[%s2043_s19 + $0x148] sm:$0xff] }
 0x103   : > { %1806 = vmatmul.msk.bf16.gmra.mxu0 %vm453_vm0, %v416_v35  ;;  %v377_v35 = vld [vmem:[%s2043_s19 + $0x140] sm:$0xff] }
 0x104   : > { %v421_v37 = vpack.c.bf16 %v378_v36, %v377_v35  ;;  %v1942_v36 = vld [vmem:[%s2585_s7 + $0x18] sm:$0xff] }
 0x108   : > { %v596_v40 = vpop.f32.mrf.mxu0 }
 0x109   : > { %v597_v42 = vadd.f32 %v2099_v38, %v596_v40 }
 0x10b   : > { %v726_v43 = vpack.c.bf16 %v597_v42, %v595_v41 }
 0x10d   : > { %862 = vmatmul.bf16.gmra.mxu1 %v726_v43 }
 0x110   : > { %v599_v47 = vpop.f32.mrf.mxu0 }
 0x111   : > { %v600_v49 = vadd.f32 %v2099_v38, %v599_v47 }
 0x113   : > { %1807 = vmatmul.msk.bf16.gmra.mxu0 %vm453_vm0, %v417_v46 }
 0x118   : > { %v601_v48 = vpop.f32.mrf.mxu0 }
 0x119   : > { %v602_v50 = vadd.f32 %v2099_v38, %v601_v48 }
 0x11a   : > { %v828_v51 = vpop.f32.mrf.mxu1 }
 0x11b   : > { %v727_v52 = vpack.c.bf16 %v602_v50, %v600_v49  ;;  %v829_v58 = vadd.f32 %v2172_v55, %v828_v51  ;;  %v379_v51 = vld [vmem:[%s2043_s19 + $0x150] sm:$0xff] }
 0x11d   : > { %867 = vmatmul.bf16.gmra.mxu1 %v727_v52  ;;  %v988_v61 = vmax.f32 %v829_v58, 0.0  ;;  %v380_v52 = vld [vmem:[%s2043_s19 + $0x158] sm:$0xff] }
 0x11e   : > { %v422_v53 = vpack.c.bf16 %v380_v52, %v379_v51 }
 0x120   : > { %v604_v57 = vpop.f32.mrf.mxu0 }
 0x121   : > { %v605_v1 = vadd.f32 %v2099_v38, %v604_v57 }
 0x122   : > { %v830_v59 = vpop.f32.mrf.mxu1 }
 0x123   : > { %v831_v60 = vadd.f32 %v2172_v55, %v830_v59  ;;  %1808 = vmatmul.msk.bf16.gmra.mxu0 %vm453_vm0, %v418_v56 }
 0x125   : > { %v989_v62 = vmax.f32 %v831_v60, 0.0 }
 0x127   : > { %v1052_v63 = vpack.c.bf16 %v989_v62, %v988_v61 }
 0x128   : > { %v606_v0 = vpop.f32.mrf.mxu0 }
 0x129   : > { %v607_v2 = vadd.f32 %v2099_v38, %v606_v0  ;;  %1160 = vmatmul.bf16.vlgmr.msra.gmra.mxu2 %v1052_v63 }
 0x12a   : > { %v833_v3 = vpop.f32.mrf.mxu1 }
 0x12b   : > { %v728_v4 = vpack.c.bf16 %v607_v2, %v605_v1  ;;  %v834_v9 = vadd.f32 %v2172_v55, %v833_v3  ;;  %v381_v3 = vld [vmem:[%s2043_s19 + $0x160] sm:$0xff] }
 0x12d   : > { %872 = vmatmul.bf16.gmra.mxu1 %v728_v4  ;;  %v990_v12 = vmax.f32 %v834_v9, 0.0  ;;  %v382_v4 = vld [vmem:[%s2043_s19 + $0x168] sm:$0xff] }
 0x12e   : > { %v423_v5 = vpack.c.bf16 %v382_v4, %v381_v3 }
 0x130   : > { %v609_v8 = vpop.f32.mrf.mxu0 }
 0x131   : > { %v610_v16 = vadd.f32 %v2099_v38, %v609_v8 }
 0x132   : > { %v835_v10 = vpop.f32.mrf.mxu1 }
 0x133   : > { %v836_v11 = vadd.f32 %v2172_v55, %v835_v10  ;;  %1809 = vmatmul.msk.bf16.gmra.mxu0 %vm453_vm0, %v419_v7 }
 0x135   : > { %v991_v13 = vmax.f32 %v836_v11, 0.0 }
 0x137   : > { %v1053_v14 = vpack.c.bf16 %v991_v13, %v990_v12 }
 0x138   : > { %v611_v15 = vpop.f32.mrf.mxu0 }
 0x139   : > { %v612_v17 = vadd.f32 %v2099_v38, %v611_v15  ;;  %1165 = vmatmul.bf16.gmra.mxu2 %v1053_v14 }
 0x13a   : > { %v838_v18 = vpop.f32.mrf.mxu1 }
 0x13b   : > { %v729_v19 = vpack.c.bf16 %v612_v17, %v610_v16  ;;  %v839_v24 = vadd.f32 %v2172_v55, %v838_v18  ;;  %v1946_v17 = vld [vmem:[%s2585_s7 + $0x38] sm:$0xff] }
 0x13c   : > { %1485 = vmatpush.bf16.msra.mxu3 %v1946_v17 }
 0x13d   : > { %877 = vmatmul.bf16.gmra.mxu1 %v729_v19  ;;  %v992_v27 = vmax.f32 %v839_v24, 0.0  ;;  %v383_v19 = vld [vmem:[%s2043_s19 + $0x170] sm:$0xff] }
 0x140   : > { %v614_v23 = vpop.f32.mrf.mxu0  ;;  %1486 = vmatpush.bf16.msra.mxu3 %v1945_v21 }
 0x141   : > { %v615_v31 = vadd.f32 %v2099_v38, %v614_v23 }
 0x142   : > { %v840_v25 = vpop.f32.mrf.mxu1 }
 0x143   : > { %v841_v26 = vadd.f32 %v2172_v55, %v840_v25  ;;  %1810 = vmatmul.msk.bf16.gmra.mxu0 %vm453_vm0, %v420_v22  ;;  %v424_v22 = vpack.c.bf16 %v384_v20, %v383_v19 }
 0x145   : > { %v993_v28 = vmax.f32 %v841_v26, 0.0  ;;  %v1944_v26 = vld [vmem:[%s2585_s7 + $0x28] sm:$0xff] }
 0x146   : > { %1487 = vmatpush.bf16.msra.mxu3 %v1944_v26 }
 0x147   : > { %v1054_v29 = vpack.c.bf16 %v993_v28, %v992_v27 }
 0x148   : > { %v616_v30 = vpop.f32.mrf.mxu0 }
 0x149   : > { %v617_v32 = vadd.f32 %v2099_v38, %v616_v30  ;;  %1170 = vmatmul.bf16.gmra.mxu2 %v1054_v29  ;;  %v1943_v30 = vld [vmem:[%s2585_s7 + $0x20] sm:$0xff] }
 0x14a   : > { %v843_v33 = vpop.f32.mrf.mxu1  ;;  %1488 = vmatpush.bf16.msra.mxu3 %v1943_v30 }
 0x14b   : > { %v730_v34 = vpack.c.bf16 %v617_v32, %v615_v31  ;;  %v844_v40 = vadd.f32 %v2172_v55, %v843_v33 }
 0x14d   : > { %882 = vmatmul.bf16.gmra.mxu1 %v730_v34  ;;  %v994_v43 = vmax.f32 %v844_v40, 0.0  ;;  %v386_v40 = vld [vmem:[%s2043_s19 + $0x188] sm:$0xff] }
 0x14e   : > { %1489 = vmatpush.bf16.msra.mxu3 %v1942_v36 }
 0x150   : > { %v619_v39 = vpop.f32.mrf.mxu0 }
 0x151   : > { %v620_v47 = vadd.f32 %v2099_v38, %v619_v39  ;;  %v385_v39 = vld [vmem:[%s2043_s19 + $0x180] sm:$0xff] }
 0x152   : > { %v845_v41 = vpop.f32.mrf.mxu1 }
 0x153   : > { %v846_v42 = vadd.f32 %v2172_v55, %v845_v41  ;;  %1811 = vmatmul.msk.bf16.gmra.mxu0 %vm453_vm0, %v421_v37  ;;  %v1941_v41 = vld [vmem:[%s2585_s7 + $0x10] sm:$0xff] }
 0x154   : > { %1490 = vmatpush.bf16.msra.mxu3 %v1941_v41 }
 0x155   : > { %v995_v44 = vmax.f32 %v846_v42, 0.0  ;;  %v425_v42 = vpack.c.bf16 %v386_v40, %v385_v39 }
 0x157   : > { %v1055_v45 = vpack.c.bf16 %v995_v44, %v994_v43 }
 0x158   : > { %v621_v46 = vpop.f32.mrf.mxu0 }
 0x159   : > { %v622_v48 = vadd.f32 %v2099_v38, %v621_v46  ;;  %1175 = vmatmul.bf16.gmra.mxu2 %v1055_v45  ;;  %v1940_v46 = vld [vmem:[%s2585_s7 + $0x8] sm:$0xff] }
 0x15a   : > { %v848_v49 = vpop.f32.mrf.mxu1  ;;  %1491 = vmatpush.bf16.msra.mxu3 %v1940_v46 }
 0x15b   : > { %v731_v50 = vpack.c.bf16 %v622_v48, %v620_v47  ;;  %v849_v56 = vadd.f32 %v2172_v55, %v848_v49 }
 0x15d   : > { %887 = vmatmul.bf16.gmra.mxu1 %v731_v50  ;;  %v996_v59 = vmax.f32 %v849_v56, 0.0  ;;  %v1939_v50 = vld [vmem:[%s2585_s7] sm:$0xff] }
 0x15e   : > { %1492 = vmatpush.bf16.msra.mxu3 %v1939_v50 }
 0x160   : > { %v624_v54 = vpop.f32.mrf.mxu0 }
 0x161   : > { %v625_v63 = vadd.f32 %v2099_v38, %v624_v54 }
 0x162   : > { %v850_v57 = vpop.f32.mrf.mxu1 }
 0x163   : > { %v851_v58 = vadd.f32 %v2172_v55, %v850_v57  ;;  %1812 = vmatmul.msk.bf16.gmra.mxu0 %vm453_vm0, %v422_v53 }
 0x165   : > { %v997_v60 = vmax.f32 %v851_v58, 0.0  ;;  %v387_v58 = vld [vmem:[%s2043_s19 + $0x190] sm:$0xff] }
 0x167   : > { %v1056_v61 = vpack.c.bf16 %v997_v60, %v996_v59  ;;  %v388_v59 = vld [vmem:[%s2043_s19 + $0x198] sm:$0xff] }
 0x168   : > { %v626_v62 = vpop.f32.mrf.mxu0  ;;  %v426_v60 = vpack.c.bf16 %v388_v59, %v387_v58  ;;  %v394_v58 = vld [vmem:[%s2043_s19 + $0x1c8] sm:$0xff] }
 0x169   : > { %v627_v0 = vadd.f32 %v2099_v38, %v626_v62  ;;  %1180 = vmatmul.bf16.gmra.mxu2 %v1056_v61 }
 0x16a   : > { %v853_v1 = vpop.f32.mrf.mxu1 }
 0x16b   : > { %v732_v2 = vpack.c.bf16 %v627_v0, %v625_v63  ;;  %v854_v7 = vadd.f32 %v2172_v55, %v853_v1 }
 0x16d   : > { %892 = vmatmul.bf16.gmra.mxu1 %v732_v2  ;;  %v998_v10 = vmax.f32 %v854_v7, 0.0 }
 0x170   : > { %v629_v6 = vpop.f32.mrf.mxu0 }
 0x171   : > { %v630_v14 = vadd.f32 %v2099_v38, %v629_v6 }
 0x172   : > { %v855_v8 = vpop.f32.mrf.mxu1 }
 0x173   : > { %v856_v9 = vadd.f32 %v2172_v55, %v855_v8  ;;  %1813 = vmatmul.msk.bf16.gmra.mxu0 %vm453_vm0, %v423_v5 }
 0x175   : > { %v999_v11 = vmax.f32 %v856_v9, 0.0 }
 0x177   : > { %v1057_v12 = vpack.c.bf16 %v999_v11, %v998_v10  ;;  %v389_v10 = vld [vmem:[%s2043_s19 + $0x1a0] sm:$0xff]  ;;  %v390_v11 = vld [vmem:[%s2043_s19 + $0x1a8] sm:$0xff] }
 0x178   : > { %v631_v13 = vpop.f32.mrf.mxu0 }
 0x179   : > { %v632_v15 = vadd.f32 %v2099_v38, %v631_v13  ;;  %1185 = vmatmul.bf16.gmra.mxu2 %v1057_v12  ;;  %v2264_v12 = vld [vmem:[%s2584_s6] ss:$0 sm:$0xff]  ;;  %v427_v13 = vpack.c.bf16 %v390_v11, %v389_v10 }
 0x17a   : > { %v858_v16 = vpop.f32.mrf.mxu1 }
 0x17b   : > { %v733_v18 = vpack.c.bf16 %v632_v15, %v630_v14  ;;  %v859_v24 = vadd.f32 %v2172_v55, %v858_v16 }
 0x17d   : > { %897 = vmatmul.bf16.gmra.mxu1 %v733_v18  ;;  %v1000_v28 = vmax.f32 %v859_v24, 0.0 }
 0x180   : > { %v634_v23 = vpop.f32.mrf.mxu0 }
 0x181   : > { %v635_v33 = vadd.f32 %v2099_v38, %v634_v23 }
 0x182   : > { %v860_v25 = vpop.f32.mrf.mxu1 }
 0x183   : > { %v861_v27 = vadd.f32 %v2172_v55, %v860_v25  ;;  %1814 = vmatmul.msk.bf16.gmra.mxu0 %vm453_vm0, %v424_v22 }
 0x185   : > { %v1001_v29 = vmax.f32 %v861_v27, 0.0 }
 0x187   : > { %v1058_v31 = vpack.c.bf16 %v1001_v29, %v1000_v28 }
 0x188   : > { %v636_v32 = vpop.f32.mrf.mxu0 }
 0x189   : > { %v637_v34 = vadd.f32 %v2099_v38, %v636_v32  ;;  %1190 = vmatmul.bf16.gmra.mxu2 %v1058_v31 }
 0x18a   : > { %v863_v35 = vpop.f32.mrf.mxu1 }
 0x18b   : > { %v734_v37 = vpack.c.bf16 %v637_v34, %v635_v33  ;;  %v864_v44 = vadd.f32 %v2172_v55, %v863_v35  ;;  %v391_v33 = vld [vmem:[%s2043_s19 + $0x1b0] sm:$0xff]  ;;  %v392_v34 = vld [vmem:[%s2043_s19 + $0x1b8] sm:$0xff] }
 0x18c   : > { %v428_v35 = vpack.c.bf16 %v392_v34, %v391_v33 }
 0x18d   : > { %902 = vmatmul.bf16.gmra.mxu1 %v734_v37  ;;  %v1002_v48 = vmax.f32 %v864_v44, 0.0 }
 0x190   : > { %v639_v43 = vpop.f32.mrf.mxu0 }
 0x191   : > { %v640_v53 = vadd.f32 %v2099_v38, %v639_v43 }
 0x192   : > { %v865_v45 = vpop.f32.mrf.mxu1 }
 0x193   : > { %v866_v47 = vadd.f32 %v2172_v55, %v865_v45  ;;  %1815 = vmatmul.msk.bf16.gmra.mxu0 %vm453_vm0, %v425_v42 }
 0x195   : > { %v1003_v49 = vmax.f32 %v866_v47, 0.0 }
 0x197   : > { %v1059_v51 = vpack.c.bf16 %v1003_v49, %v1002_v48 }
 0x198   : > { %v641_v52 = vpop.f32.mrf.mxu0 }
 0x199   : > { %v642_v54 = vadd.f32 %v2099_v38, %v641_v52  ;;  %1195 = vmatmul.bf16.gmra.mxu2 %v1059_v51 }
 0x19a   : > { %v868_v56 = vpop.f32.mrf.mxu1 }
 0x19b   : > { %v735_v57 = vpack.c.bf16 %v642_v54, %v640_v53  ;;  %v869_v62 = vadd.f32 %v2172_v55, %v868_v56 }
 0x19d   : > { %907 = vmatmul.bf16.gmra.mxu1 %v735_v57  ;;  %v1004_v1 = vmax.f32 %v869_v62, 0.0  ;;  %v393_v57 = vld [vmem:[%s2043_s19 + $0x1c0] sm:$0xff] }
 0x19e   : > { %v429_v59 = vpack.c.bf16 %v394_v58, %v393_v57 }
 0x1a0   : > { %v644_v61 = vpop.f32.mrf.mxu0 }
 0x1a1   : > { %v645_v5 = vadd.f32 %v2099_v38, %v644_v61 }
 0x1a2   : > { %v870_v63 = vpop.f32.mrf.mxu1 }
 0x1a3   : > { %v871_v0 = vadd.f32 %v2172_v55, %v870_v63  ;;  %1816 = vmatmul.msk.bf16.gmra.mxu0 %vm453_vm0, %v426_v60 }
 0x1a5   : > { %v1005_v2 = vmax.f32 %v871_v0, 0.0 }
 0x1a7   : > { %v1060_v3 = vpack.c.bf16 %v1005_v2, %v1004_v1 }
 0x1a8   : > { %v646_v4 = vpop.f32.mrf.mxu0 }
 0x1a9   : > { %v647_v6 = vadd.f32 %v2099_v38, %v646_v4  ;;  %1200 = vmatmul.bf16.gmra.mxu2 %v1060_v3 }
 0x1aa   : > { %v873_v7 = vpop.f32.mrf.mxu1 }
 0x1ab   : > { %v736_v8 = vpack.c.bf16 %v647_v6, %v645_v5  ;;  %v874_v15 = vadd.f32 %v2172_v55, %v873_v7 }
 0x1ac   : > { %v1161_v9 = vpop.f32.mrf.mxu2 }
 0x1ad   : > { %912 = vmatmul.bf16.gmra.mxu1 %v736_v8  ;;  %v1162_v17 = vadd.f32 %v2264_v12, %v1161_v9  ;;  %v1006_v20 = vmax.f32 %v874_v15, 0.0 }
 0x1af   : > { %v1321_v23 = vmax.f32 %v1162_v17, 0.0  ;;  %v396_v17 = vld [vmem:[%s2043_s19 + $0x1d8] sm:$0xff] }
 0x1b0   : > { %v649_v14 = vpop.f32.mrf.mxu0 }
 0x1b1   : > { %v650_v27 = vadd.f32 %v2099_v38, %v649_v14 }
 0x1b2   : > { %v875_v16 = vpop.f32.mrf.mxu1 }
 0x1b3   : > { %v876_v18 = vadd.f32 %v2172_v55, %v875_v16  ;;  %1817 = vmatmul.msk.bf16.gmra.mxu0 %vm453_vm0, %v427_v13  ;;  %v395_v16 = vld [vmem:[%s2043_s19 + $0x1d0] sm:$0xff] }
 0x1b4   : > { %v1163_v19 = vpop.f32.mrf.mxu2 }
 0x1b5   : > { %v1007_v21 = vmax.f32 %v876_v18, 0.0  ;;  %v1164_v22 = vadd.f32 %v2264_v12, %v1163_v19  ;;  %v430_v18 = vpack.c.bf16 %v396_v17, %v395_v16 }
 0x1b7   : > { %v1322_v24 = vmax.f32 %v1164_v22, 0.0  ;;  %v1061_v25 = vpack.c.bf16 %v1007_v21, %v1006_v20 }
 0x1b8   : > { %v651_v26 = vpop.f32.mrf.mxu0 }
 0x1b9   : > { %v652_v28 = vadd.f32 %v2099_v38, %v651_v26  ;;  %1205 = vmatmul.bf16.gmra.mxu2 %v1061_v25  ;;  %v1385_v29 = vpack.c.bf16 %v1322_v24, %v1321_v23 }
 0x1ba   : > { %v878_v30 = vpop.f32.mrf.mxu1 }
 0x1bb   : > { %v737_v31 = vpack.c.bf16 %v652_v28, %v650_v27  ;;  %1493 = vmatmul.bf16.vlgmr.msra.gmra.mxu3 %v1385_v29  ;;  %v879_v37 = vadd.f32 %v2172_v55, %v878_v30 }
 0x1bc   : > { %v1166_v32 = vpop.f32.mrf.mxu2 }
 0x1bd   : > { %917 = vmatmul.bf16.gmra.mxu1 %v737_v31  ;;  %v1167_v40 = vadd.f32 %v2264_v12, %v1166_v32  ;;  %v1008_v43 = vmax.f32 %v879_v37, 0.0 }
 0x1bf   : > { %v1323_v46 = vmax.f32 %v1167_v40, 0.0  ;;  %v398_v40 = vld [vmem:[%s2043_s19 + $0x1e8] sm:$0xff] }
 0x1c0   : > { %v654_v36 = vpop.f32.mrf.mxu0 }
 0x1c1   : > { %v655_v50 = vadd.f32 %v2099_v38, %v654_v36 }
 0x1c2   : > { %v880_v39 = vpop.f32.mrf.mxu1 }
 0x1c3   : > { %v881_v41 = vadd.f32 %v2172_v55, %v880_v39  ;;  %1818 = vmatmul.msk.bf16.gmra.mxu0 %vm453_vm0, %v428_v35  ;;  %v397_v39 = vld [vmem:[%s2043_s19 + $0x1e0] sm:$0xff] }
 0x1c4   : > { %v1168_v42 = vpop.f32.mrf.mxu2 }
 0x1c5   : > { %v1009_v44 = vmax.f32 %v881_v41, 0.0  ;;  %v1169_v45 = vadd.f32 %v2264_v12, %v1168_v42  ;;  %v431_v41 = vpack.c.bf16 %v398_v40, %v397_v39 }
 0x1c7   : > { %v1324_v47 = vmax.f32 %v1169_v45, 0.0  ;;  %v1062_v48 = vpack.c.bf16 %v1009_v44, %v1008_v43 }
 0x1c8   : > { %v656_v49 = vpop.f32.mrf.mxu0 }
 0x1c9   : > { %v657_v51 = vadd.f32 %v2099_v38, %v656_v49  ;;  %1210 = vmatmul.bf16.gmra.mxu2 %v1062_v48  ;;  %v1386_v52 = vpack.c.bf16 %v1324_v47, %v1323_v46 }
 0x1ca   : > { %v883_v53 = vpop.f32.mrf.mxu1 }
 0x1cb   : > { %v738_v54 = vpack.c.bf16 %v657_v51, %v655_v50  ;;  %1498 = vmatmul.bf16.gmra.mxu3 %v1386_v52  ;;  %v884_v61 = vadd.f32 %v2172_v55, %v883_v53 }
 0x1cc   : > { %v1171_v56 = vpop.f32.mrf.mxu2 }
 0x1cd   : > { %922 = vmatmul.bf16.gmra.mxu1 %v738_v54  ;;  %v1172_v63 = vadd.f32 %v2264_v12, %v1171_v56  ;;  %v1010_v2 = vmax.f32 %v884_v61, 0.0 }
 0x1cf   : > { %v1325_v5 = vmax.f32 %v1172_v63, 0.0  ;;  %v400_v63 = vld [vmem:[%s2043_s19 + $0x1f8] sm:$0xff] }
 0x1d0   : > { %v659_v60 = vpop.f32.mrf.mxu0 }
 0x1d1   : > { %v660_v9 = vadd.f32 %v2099_v38, %v659_v60 }
 0x1d2   : > { %v885_v62 = vpop.f32.mrf.mxu1 }
 0x1d3   : > { %v886_v0 = vadd.f32 %v2172_v55, %v885_v62  ;;  %1819 = vmatmul.msk.bf16.gmra.mxu0 %vm453_vm0, %v429_v59  ;;  %v399_v62 = vld [vmem:[%s2043_s19 + $0x1f0] sm:$0xff] }
 0x1d4   : > { %v1173_v1 = vpop.f32.mrf.mxu2 }
 0x1d5   : > { %v1011_v3 = vmax.f32 %v886_v0, 0.0  ;;  %v1174_v4 = vadd.f32 %v2264_v12, %v1173_v1  ;;  %v432_v0 = vpack.c.bf16 %v400_v63, %v399_v62 }
 0x1d7   : > { %v1326_v6 = vmax.f32 %v1174_v4, 0.0  ;;  %v1063_v7 = vpack.c.bf16 %v1011_v3, %v1010_v2 }
 0x1d8   : > { %v661_v8 = vpop.f32.mrf.mxu0 }
 0x1d9   : > { %v662_v10 = vadd.f32 %v2099_v38, %v661_v8  ;;  %1215 = vmatmul.bf16.gmra.mxu2 %v1063_v7  ;;  %v1387_v11 = vpack.c.bf16 %v1326_v6, %v1325_v5 }
 0x1da   : > { %v888_v13 = vpop.f32.mrf.mxu1 }
 0x1db   : > { %v739_v14 = vpack.c.bf16 %v662_v10, %v660_v9  ;;  %1503 = vmatmul.bf16.gmra.mxu3 %v1387_v11  ;;  %v889_v20 = vadd.f32 %v2172_v55, %v888_v13 }
 0x1dc   : > { %v1176_v15 = vpop.f32.mrf.mxu2 }
 0x1dd   : > { %927 = vmatmul.bf16.gmra.mxu1 %v739_v14  ;;  %v1177_v22 = vadd.f32 %v2264_v12, %v1176_v15  ;;  %v1012_v25 = vmax.f32 %v889_v20, 0.0 }
 0x1df   : > { %v1327_v28 = vmax.f32 %v1177_v22, 0.0 }
 0x1e0   : > { %v664_v19 = vpop.f32.mrf.mxu0 }
 0x1e1   : > { %v665_v32 = vadd.f32 %v2099_v38, %v664_v19 }
 0x1e2   : > { %v890_v21 = vpop.f32.mrf.mxu1 }
 0x1e3   : > { %v891_v23 = vadd.f32 %v2172_v55, %v890_v21  ;;  %1820 = vmatmul.msk.bf16.gmra.mxu0 %vm453_vm0, %v430_v18 }
 0x1e4   : > { %v1178_v24 = vpop.f32.mrf.mxu2 }
 0x1e5   : > { %v1013_v26 = vmax.f32 %v891_v23, 0.0  ;;  %v1179_v27 = vadd.f32 %v2264_v12, %v1178_v24 }
 0x1e7   : > { %v1328_v29 = vmax.f32 %v1179_v27, 0.0  ;;  %v1064_v30 = vpack.c.bf16 %v1013_v26, %v1012_v25 }
 0x1e8   : > { %v666_v31 = vpop.f32.mrf.mxu0 }
 0x1e9   : > { %v667_v33 = vadd.f32 %v2099_v38, %v666_v31  ;;  %1220 = vmatmul.bf16.gmra.mxu2 %v1064_v30  ;;  %v1388_v34 = vpack.c.bf16 %v1328_v29, %v1327_v28 }
 0x1ea   : > { %v893_v35 = vpop.f32.mrf.mxu1 }
 0x1eb   : > { %v740_v36 = vpack.c.bf16 %v667_v33, %v665_v32  ;;  %1508 = vmatmul.bf16.gmra.mxu3 %v1388_v34  ;;  %v894_v43 = vadd.f32 %v2172_v55, %v893_v35 }
 0x1ec   : > { %v1181_v37 = vpop.f32.mrf.mxu2 }
 0x1ed   : > { %932 = vmatmul.bf16.gmra.mxu1 %v740_v36  ;;  %v1182_v45 = vadd.f32 %v2264_v12, %v1181_v37  ;;  %v1014_v48 = vmax.f32 %v894_v43, 0.0 }
 0x1ef   : > { %v1329_v51 = vmax.f32 %v1182_v45, 0.0 }
 0x1f0   : > { %v669_v42 = vpop.f32.mrf.mxu0 }
 0x1f1   : > { %v670_v56 = vadd.f32 %v2099_v38, %v669_v42 }
 0x1f2   : > { %v895_v44 = vpop.f32.mrf.mxu1 }
 0x1f3   : > { %v896_v46 = vadd.f32 %v2172_v55, %v895_v44  ;;  %1821 = vmatmul.msk.bf16.gmra.mxu0 %vm453_vm0, %v431_v41 }
 0x1f4   : > { %v1183_v47 = vpop.f32.mrf.mxu2 }
 0x1f5   : > { %v1015_v49 = vmax.f32 %v896_v46, 0.0  ;;  %v1184_v50 = vadd.f32 %v2264_v12, %v1183_v47 }
 0x1f7   : > { %v1330_v52 = vmax.f32 %v1184_v50, 0.0  ;;  %v1065_v53 = vpack.c.bf16 %v1015_v49, %v1014_v48 }
 0x1f8   : > { %v671_v54 = vpop.f32.mrf.mxu0 }
 0x1f9   : > { %v672_v57 = vadd.f32 %v2099_v38, %v671_v54  ;;  %1225 = vmatmul.bf16.gmra.mxu2 %v1065_v53  ;;  %v1389_v58 = vpack.c.bf16 %v1330_v52, %v1329_v51 }
 0x1fa   : > { %v898_v59 = vpop.f32.mrf.mxu1 }
 0x1fb   : > { %v741_v60 = vpack.c.bf16 %v672_v57, %v670_v56  ;;  %1513 = vmatmul.bf16.gmra.mxu3 %v1389_v58  ;;  %v899_v2 = vadd.f32 %v2172_v55, %v898_v59 }
 0x1fc   : > { %v1186_v61 = vpop.f32.mrf.mxu2 }
 0x1fd   : > { %937 = vmatmul.bf16.gmra.mxu1 %v741_v60  ;;  %v1187_v4 = vadd.f32 %v2264_v12, %v1186_v61  ;;  %v1016_v7 = vmax.f32 %v899_v2, 0.0 }
 0x1ff   : > { %v1331_v10 = vmax.f32 %v1187_v4, 0.0 }
 0x200   : > { %v674_v1 = vpop.f32.mrf.mxu0 }
 0x201   : > { %v675_v15 = vadd.f32 %v2099_v38, %v674_v1 }
 0x202   : > { %v900_v3 = vpop.f32.mrf.mxu1 }
 0x203   : > { %v901_v5 = vadd.f32 %v2172_v55, %v900_v3  ;;  %1822 = vmatmul.msk.bf16.gmra.mxu0 %vm453_vm0, %v432_v0 }
 0x204   : > { %v1188_v6 = vpop.f32.mrf.mxu2 }
 0x205   : > { %v1017_v8 = vmax.f32 %v901_v5, 0.0  ;;  %v1189_v9 = vadd.f32 %v2264_v12, %v1188_v6 }
 0x207   : > { %v1332_v11 = vmax.f32 %v1189_v9, 0.0  ;;  %v1066_v13 = vpack.c.bf16 %v1017_v8, %v1016_v7 }
 0x208   : > { %v676_v14 = vpop.f32.mrf.mxu0 }
 0x209   : > { %v677_v16 = vadd.f32 %v2099_v38, %v676_v14  ;;  %1230 = vmatmul.bf16.gmra.mxu2 %v1066_v13  ;;  %v1390_v17 = vpack.c.bf16 %v1332_v11, %v1331_v10 }
 0x20a   : > { %v903_v18 = vpop.f32.mrf.mxu1 }
 0x20b   : > { %v742_v19 = vpack.c.bf16 %v677_v16, %v675_v15  ;;  %1518 = vmatmul.bf16.gmra.mxu3 %v1390_v17  ;;  %v904_v22 = vadd.f32 %v2172_v55, %v903_v18  ;;  %v2339_v16 = vld [vmem:[%s2586_s8] ss:$0 sm:$0xff] }
 0x20c   : > { %v1191_v20 = vpop.f32.mrf.mxu2 }
 0x20d   : > { %942 = vmatmul.bf16.gmra.mxu1 %v742_v19  ;;  %v1192_v24 = vadd.f32 %v2264_v12, %v1191_v20  ;;  %v1018_v27 = vmax.f32 %v904_v22, 0.0 }
 0x20f   : > { %v1333_v30 = vmax.f32 %v1192_v24, 0.0 }
 0x210   : > { %v679_v21 = vpop.f32.mrf.mxu0 }
 0x211   : > { %v680_v34 = vadd.f32 %v2099_v38, %v679_v21 }
 0x212   : > { %v905_v23 = vpop.f32.mrf.mxu1 }
 0x213   : > { %v906_v25 = vadd.f32 %v2172_v55, %v905_v23 }
 0x214   : > { %v1193_v26 = vpop.f32.mrf.mxu2 }
 0x215   : > { %v1019_v28 = vmax.f32 %v906_v25, 0.0  ;;  %v1194_v29 = vadd.f32 %v2264_v12, %v1193_v26 }
 0x217   : > { %v1334_v31 = vmax.f32 %v1194_v29, 0.0  ;;  %v1067_v32 = vpack.c.bf16 %v1019_v28, %v1018_v27 }
 0x218   : > { %v681_v33 = vpop.f32.mrf.mxu0 }
 0x219   : > { %v682_v35 = vadd.f32 %v2099_v38, %v681_v33  ;;  %1235 = vmatmul.bf16.gmra.mxu2 %v1067_v32  ;;  %v1391_v36 = vpack.c.bf16 %v1334_v31, %v1333_v30 }
 0x21a   : > { %v908_v37 = vpop.f32.mrf.mxu1 }
 0x21b   : > { %v743_v39 = vpack.c.bf16 %v682_v35, %v680_v34  ;;  %1523 = vmatmul.bf16.gmra.mxu3 %v1391_v36  ;;  %v909_v42 = vadd.f32 %v2172_v55, %v908_v37  ;;  %v2358_v34 = vld [vmem:[%s2580_s2] ss:$0 sm:$0xff] }
 0x21c   : > { %v1196_v40 = vpop.f32.mrf.mxu2 }
 0x21d   : > { %947 = vmatmul.bf16.gmra.mxu1 %v743_v39  ;;  %v1197_v44 = vadd.f32 %v2264_v12, %v1196_v40  ;;  %v1020_v47 = vmax.f32 %v909_v42, 0.0 }
 0x21f   : > { %v1335_v50 = vmax.f32 %v1197_v44, 0.0 }
 0x220   : > { %v684_v41 = vpop.f32.mrf.mxu0 }
 0x221   : > { %v685_v54 = vadd.f32 %v2099_v38, %v684_v41 }
 0x222   : > { %v910_v43 = vpop.f32.mrf.mxu1 }
 0x223   : > { %v911_v45 = vadd.f32 %v2172_v55, %v910_v43 }
 0x224   : > { %v1198_v46 = vpop.f32.mrf.mxu2 }
 0x225   : > { %v1021_v48 = vmax.f32 %v911_v45, 0.0  ;;  %v1199_v49 = vadd.f32 %v2264_v12, %v1198_v46 }
 0x227   : > { %v1336_v51 = vmax.f32 %v1199_v49, 0.0  ;;  %v1068_v52 = vpack.c.bf16 %v1021_v48, %v1020_v47 }
 0x228   : > { %v686_v53 = vpop.f32.mrf.mxu0 }
 0x229   : > { %v687_v56 = vadd.f32 %v2099_v38, %v686_v53  ;;  %1240 = vmatmul.bf16.gmra.mxu2 %v1068_v52  ;;  %v1392_v57 = vpack.c.bf16 %v1336_v51, %v1335_v50 }
 0x22a   : > { %v913_v58 = vpop.f32.mrf.mxu1 }
 0x22b   : > { %v744_v59 = vpack.c.bf16 %v687_v56, %v685_v54  ;;  %1528 = vmatmul.bf16.gmra.mxu3 %v1392_v57  ;;  %v914_v62 = vadd.f32 %v2172_v55, %v913_v58 }
 0x22c   : > { %v1201_v60 = vpop.f32.mrf.mxu2 }
 0x22d   : > { %952 = vmatmul.bf16.gmra.mxu1 %v744_v59  ;;  %v1202_v0 = vadd.f32 %v2264_v12, %v1201_v60  ;;  %v1022_v3 = vmax.f32 %v914_v62, 0.0 }
 0x22f   : > { %v1337_v6 = vmax.f32 %v1202_v0, 0.0 }
 0x230   : > { %v689_v61 = vpop.f32.mrf.mxu0 }
 0x231   : > { %v690_v10 = vadd.f32 %v2099_v38, %v689_v61 }
 0x232   : > { %v915_v63 = vpop.f32.mrf.mxu1 }
 0x233   : > { %v916_v1 = vadd.f32 %v2172_v55, %v915_v63 }
 0x234   : > { %v1203_v2 = vpop.f32.mrf.mxu2 }
 0x235   : > { %v1023_v4 = vmax.f32 %v916_v1, 0.0  ;;  %v1204_v5 = vadd.f32 %v2264_v12, %v1203_v2 }
 0x237   : > { %v1338_v7 = vmax.f32 %v1204_v5, 0.0  ;;  %v1069_v8 = vpack.c.bf16 %v1023_v4, %v1022_v3 }
 0x238   : > { %v691_v9 = vpop.f32.mrf.mxu0 }
 0x239   : > { %v692_v11 = vadd.f32 %v2099_v38, %v691_v9  ;;  %1245 = vmatmul.bf16.gmra.mxu2 %v1069_v8  ;;  %v1393_v13 = vpack.c.bf16 %v1338_v7, %v1337_v6 }
 0x23a   : > { %v918_v14 = vpop.f32.mrf.mxu1 }
 0x23b   : > { %v745_v15 = vpack.c.bf16 %v692_v11, %v690_v10  ;;  %1533 = vmatmul.bf16.gmra.mxu3 %v1393_v13  ;;  %v919_v20 = vadd.f32 %v2172_v55, %v918_v14 }
 0x23c   : > { %v1206_v17 = vpop.f32.mrf.mxu2 }
 0x23d   : > { %957 = vmatmul.bf16.gmra.mxu1 %v745_v15  ;;  %v1207_v22 = vadd.f32 %v2264_v12, %v1206_v17  ;;  %v1024_v25 = vmax.f32 %v919_v20, 0.0 }
 0x23e   : > { %v1494_v38 = vpop.f32.mrf.mxu3 }
 0x23f   : > { %v1495_v18 = vadd.f32 %v2339_v16, %v1494_v38  ;;  %v1339_v29 = vmax.f32 %v1207_v22, 0.0 }
 0x240   : > { %v694_v19 = vpop.f32.mrf.mxu0 }
 0x241   : > { %1654 = vst [vmem:[%s2346_s26] sm:$0xff] %v1495_v18  ;;  %v695_v35 = vadd.f32 %v2358_v34, %v694_v19 }
 0x242   : > { %v920_v21 = vpop.f32.mrf.mxu1 }
 0x243   : > { %v921_v23 = vadd.f32 %v2172_v55, %v920_v21 }
 0x244   : > { %v1208_v24 = vpop.f32.mrf.mxu2 }
 0x245   : > { %v1025_v26 = vmax.f32 %v921_v23, 0.0  ;;  %v1209_v27 = vadd.f32 %v2264_v12, %v1208_v24 }
 0x246   : > { %v1496_v28 = vpop.f32.mrf.mxu3 }
 0x247   : > { %v1340_v30 = vmax.f32 %v1209_v27, 0.0  ;;  %v1497_v31 = vadd.f32 %v2339_v16, %v1496_v28  ;;  %v1070_v32 = vpack.c.bf16 %v1025_v26, %v1024_v25 }
 0x248   : > { %v696_v33 = vpop.f32.mrf.mxu0 }
 0x249   : > { %1655 = vst [vmem:[%s2346_s26 + $0x8] sm:$0xff] %v1497_v31  ;;  %v697_v36 = vadd.f32 %v2358_v34, %v696_v33  ;;  %1250 = vmatmul.bf16.gmra.mxu2 %v1070_v32  ;;  %v1394_v37 = vpack.c.bf16 %v1340_v30, %v1339_v29 }
 0x24a   : > { %v923_v39 = vpop.f32.mrf.mxu1 }
 0x24b   : > { %v746_v40 = vpack.c.bf16 %v697_v36, %v695_v35  ;;  %1538 = vmatmul.bf16.gmra.mxu3 %v1394_v37  ;;  %v924_v45 = vadd.f32 %v2172_v55, %v923_v39 }
 0x24c   : > { %v1211_v41 = vpop.f32.mrf.mxu2 }
 0x24d   : > { %962 = vmatmul.bf16.gmra.mxu1 %v746_v40  ;;  %v1212_v47 = vadd.f32 %v2264_v12, %v1211_v41  ;;  %v1026_v50 = vmax.f32 %v924_v45, 0.0 }
 0x24e   : > { %v1499_v42 = vpop.f32.mrf.mxu3 }
 0x24f   : > { %v1500_v43 = vadd.f32 %v2339_v16, %v1499_v42  ;;  %v1341_v54 = vmax.f32 %v1212_v47, 0.0 }
 0x250   : > { %v699_v44 = vpop.f32.mrf.mxu0 }
 0x251   : > { %1656 = vst [vmem:[%s2346_s26 + $0x10] sm:$0xff] %v1500_v43  ;;  %v700_v60 = vadd.f32 %v2358_v34, %v699_v44 }
 0x252   : > { %v925_v46 = vpop.f32.mrf.mxu1 }
 0x253   : > { %v926_v48 = vadd.f32 %v2172_v55, %v925_v46 }
 0x254   : > { %v1213_v49 = vpop.f32.mrf.mxu2 }
 0x255   : > { %v1027_v51 = vmax.f32 %v926_v48, 0.0  ;;  %v1214_v52 = vadd.f32 %v2264_v12, %v1213_v49 }
 0x256   : > { %v1501_v53 = vpop.f32.mrf.mxu3 }
 0x257   : > { %v1342_v56 = vmax.f32 %v1214_v52, 0.0  ;;  %v1502_v57 = vadd.f32 %v2339_v16, %v1501_v53  ;;  %v1071_v58 = vpack.c.bf16 %v1027_v51, %v1026_v50  ;;  %v2397_v53 = vld [vmem:[%s2582_s4] ss:$0 sm:$0xff] }
 0x258   : > { %v701_v59 = vpop.f32.mrf.mxu0 }
 0x259   : > { %1657 = vst [vmem:[%s2346_s26 + $0x18] sm:$0xff] %v1502_v57  ;;  %v702_v61 = vadd.f32 %v2358_v34, %v701_v59  ;;  %1255 = vmatmul.bf16.gmra.mxu2 %v1071_v58  ;;  %v1395_v62 = vpack.c.bf16 %v1342_v56, %v1341_v54 }
 0x25a   : > { %v928_v63 = vpop.f32.mrf.mxu1 }
 0x25b   : > { %v747_v0 = vpack.c.bf16 %v702_v61, %v700_v60  ;;  %1543 = vmatmul.bf16.gmra.mxu3 %v1395_v62  ;;  %v929_v5 = vadd.f32 %v2172_v55, %v928_v63 }
 0x25c   : > { %v1216_v1 = vpop.f32.mrf.mxu2 }
 0x25d   : > { %967 = vmatmul.bf16.gmra.mxu1 %v747_v0  ;;  %v1217_v7 = vadd.f32 %v2264_v12, %v1216_v1  ;;  %v1028_v10 = vmax.f32 %v929_v5, 0.0 }
 0x25e   : > { %v1504_v2 = vpop.f32.mrf.mxu3 }
 0x25f   : > { %v1505_v3 = vadd.f32 %v2339_v16, %v1504_v2  ;;  %v1343_v15 = vmax.f32 %v1217_v7, 0.0 }
 0x260   : > { %v704_v4 = vpop.f32.mrf.mxu0 }
 0x261   : > { %1658 = vst [vmem:[%s2346_s26 + $0x20] sm:$0xff] %v1505_v3  ;;  %v705_v20 = vadd.f32 %v2358_v34, %v704_v4 }
 0x262   : > { %v930_v6 = vpop.f32.mrf.mxu1 }
 0x263   : > { %v931_v8 = vadd.f32 %v2172_v55, %v930_v6 }
 0x264   : > { %v1218_v9 = vpop.f32.mrf.mxu2 }
 0x265   : > { %v1029_v11 = vmax.f32 %v931_v8, 0.0  ;;  %v1219_v13 = vadd.f32 %v2264_v12, %v1218_v9 }
 0x266   : > { %v1506_v14 = vpop.f32.mrf.mxu3 }
 0x267   : > { %v1072_v17 = vpack.c.bf16 %v1029_v11, %v1028_v10  ;;  %v1344_v38 = vmax.f32 %v1219_v13, 0.0  ;;  %v1507_v18 = vadd.f32 %v2339_v16, %v1506_v14 }
 0x268   : > { %v706_v19 = vpop.f32.mrf.mxu0 }
 0x269   : > { %1659 = vst [vmem:[%s2346_s26 + $0x28] sm:$0xff] %v1507_v18  ;;  %v707_v21 = vadd.f32 %v2358_v34, %v706_v19  ;;  %1260 = vmatmul.bf16.gmra.mxu2 %v1072_v17  ;;  %v1396_v22 = vpack.c.bf16 %v1344_v38, %v1343_v15 }
 0x26a   : > { %v933_v23 = vpop.f32.mrf.mxu1 }
 0x26b   : > { %v748_v24 = vpack.c.bf16 %v707_v21, %v705_v20  ;;  %1548 = vmatmul.bf16.gmra.mxu3 %v1396_v22  ;;  %v934_v29 = vadd.f32 %v2172_v55, %v933_v23 }
 0x26c   : > { %v1221_v25 = vpop.f32.mrf.mxu2 }
 0x26d   : > { %972 = vmatmul.bf16.gmra.mxu1 %v748_v24  ;;  %v1222_v31 = vadd.f32 %v2264_v12, %v1221_v25  ;;  %v1030_v35 = vmax.f32 %v934_v29, 0.0 }
 0x26e   : > { %v1509_v26 = vpop.f32.mrf.mxu3 }
 0x26f   : > { %v1510_v27 = vadd.f32 %v2339_v16, %v1509_v26  ;;  %v1345_v40 = vmax.f32 %v1222_v31, 0.0 }
 0x270   : > { %v709_v28 = vpop.f32.mrf.mxu0 }
 0x271   : > { %1660 = vst [vmem:[%s2346_s26 + $0x30] sm:$0xff] %v1510_v27  ;;  %v710_v45 = vadd.f32 %v2358_v34, %v709_v28 }
 0x272   : > { %v935_v30 = vpop.f32.mrf.mxu1 }
 0x273   : > { %v936_v32 = vadd.f32 %v2172_v55, %v935_v30 }
 0x274   : > { %v1223_v33 = vpop.f32.mrf.mxu2 }
 0x275   : > { %v1031_v36 = vmax.f32 %v936_v32, 0.0  ;;  %v1224_v37 = vadd.f32 %v2264_v12, %v1223_v33 }
 0x276   : > { %v1511_v39 = vpop.f32.mrf.mxu3 }
 0x277   : > { %v1073_v41 = vpack.c.bf16 %v1031_v36, %v1030_v35  ;;  %v1346_v42 = vmax.f32 %v1224_v37, 0.0  ;;  %v1512_v43 = vadd.f32 %v2339_v16, %v1511_v39 }
 0x278   : > { %v711_v44 = vpop.f32.mrf.mxu0 }
 0x279   : > { %1661 = vst [vmem:[%s2346_s26 + $0x38] sm:$0xff] %v1512_v43  ;;  %v712_v46 = vadd.f32 %v2358_v34, %v711_v44  ;;  %1265 = vmatmul.bf16.gmra.mxu2 %v1073_v41  ;;  %v1397_v55 = vpack.c.bf16 %v1346_v42, %v1345_v40 }
 0x27a   : > { %v938_v47 = vpop.f32.mrf.mxu1 }
 0x27b   : > { %v749_v48 = vpack.c.bf16 %v712_v46, %v710_v45  ;;  %1553 = vmatmul.bf16.gmra.mxu3 %v1397_v55  ;;  %v939_v54 = vadd.f32 %v2397_v53, %v938_v47 }
 0x27c   : > { %v1226_v49 = vpop.f32.mrf.mxu2 }
 0x27d   : > { %977 = vmatmul.bf16.gmra.mxu1 %v749_v48  ;;  %v1227_v57 = vadd.f32 %v2264_v12, %v1226_v49  ;;  %v1032_v60 = vmax.f32 %v939_v54, 0.0 }
 0x27e   : > { %v1514_v50 = vpop.f32.mrf.mxu3 }
 0x27f   : > { %v1515_v51 = vadd.f32 %v2339_v16, %v1514_v50  ;;  %v1347_v0 = vmax.f32 %v1227_v57, 0.0 }
 0x280   : > { %v714_v52 = vpop.f32.mrf.mxu0 }
 0x281   : > { %1662 = vst [vmem:[%s2346_s26 + $0x40] sm:$0xff] %v1515_v51  ;;  %v715_v5 = vadd.f32 %v2358_v34, %v714_v52 }
 0x282   : > { %v940_v56 = vpop.f32.mrf.mxu1 }
 0x283   : > { %v941_v58 = vadd.f32 %v2397_v53, %v940_v56 }
 0x284   : > { %v1228_v59 = vpop.f32.mrf.mxu2 }
 0x285   : > { %v1033_v61 = vmax.f32 %v941_v58, 0.0  ;;  %v1229_v62 = vadd.f32 %v2264_v12, %v1228_v59 }
 0x286   : > { %v1516_v63 = vpop.f32.mrf.mxu3 }
 0x287   : > { %v1074_v1 = vpack.c.bf16 %v1033_v61, %v1032_v60  ;;  %v1348_v2 = vmax.f32 %v1229_v62, 0.0  ;;  %v1517_v3 = vadd.f32 %v2339_v16, %v1516_v63 }
 0x288   : > { %v716_v4 = vpop.f32.mrf.mxu0 }
 0x289   : > { %1663 = vst [vmem:[%s2346_s26 + $0x48] sm:$0xff] %v1517_v3  ;;  %v717_v6 = vadd.f32 %v2358_v34, %v716_v4  ;;  %1270 = vmatmul.bf16.gmra.mxu2 %v1074_v1  ;;  %v1398_v7 = vpack.c.bf16 %v1348_v2, %v1347_v0 }
 0x28a   : > { %v943_v8 = vpop.f32.mrf.mxu1 }
 0x28b   : > { %v750_v9 = vpack.c.bf16 %v717_v6, %v715_v5  ;;  %1558 = vmatmul.bf16.gmra.mxu3 %v1398_v7  ;;  %v944_v14 = vadd.f32 %v2397_v53, %v943_v8 }
 0x28c   : > { %v1231_v10 = vpop.f32.mrf.mxu2 }
 0x28d   : > { %982 = vmatmul.bf16.gmra.mxu1 %v750_v9  ;;  %v1232_v17 = vadd.f32 %v2264_v12, %v1231_v10  ;;  %v1034_v18 = vmax.f32 %v944_v14, 0.0 }
 0x28e   : > { %v1519_v11 = vpop.f32.mrf.mxu3 }
 0x28f   : > { %v1520_v13 = vadd.f32 %v2339_v16, %v1519_v11  ;;  %v1349_v22 = vmax.f32 %v1232_v17, 0.0 }
 0x291   : > { %1664 = vst [vmem:[%s2346_s26 + $0x50] sm:$0xff] %v1520_v13 }
 0x292   : > { %v945_v15 = vpop.f32.mrf.mxu1 }
 0x293   : > { %v946_v38 = vadd.f32 %v2397_v53, %v945_v15 }
 0x294   : > { %v1233_v34 = vpop.f32.mrf.mxu2 }
 0x295   : > { %v1035_v19 = vmax.f32 %v946_v38, 0.0  ;;  %v1234_v20 = vadd.f32 %v2264_v12, %v1233_v34 }
 0x296   : > { %v1521_v21 = vpop.f32.mrf.mxu3 }
 0x297   : > { %v1075_v23 = vpack.c.bf16 %v1035_v19, %v1034_v18  ;;  %v1350_v24 = vmax.f32 %v1234_v20, 0.0  ;;  %v1522_v25 = vadd.f32 %v2339_v16, %v1521_v21 }
 0x299   : > { %1665 = vst [vmem:[%s2346_s26 + $0x58] sm:$0xff] %v1522_v25  ;;  %1275 = vmatmul.bf16.gmra.mxu2 %v1075_v23  ;;  %v1399_v26 = vpack.c.bf16 %v1350_v24, %v1349_v22 }
 0x29a   : > { %v948_v27 = vpop.f32.mrf.mxu1 }
 0x29b   : > { %1563 = vmatmul.bf16.gmra.mxu3 %v1399_v26  ;;  %v949_v31 = vadd.f32 %v2397_v53, %v948_v27 }
 0x29c   : > { %v1236_v28 = vpop.f32.mrf.mxu2 }
 0x29d   : > { %v1237_v33 = vadd.f32 %v2264_v12, %v1236_v28  ;;  %v1036_v37 = vmax.f32 %v949_v31, 0.0 }
 0x29e   : > { %v1524_v29 = vpop.f32.mrf.mxu3 }
 0x29f   : > { %v1525_v30 = vadd.f32 %v2339_v16, %v1524_v29  ;;  %v1351_v42 = vmax.f32 %v1237_v33, 0.0 }
 0x2a1   : > { %1666 = vst [vmem:[%s2346_s26 + $0x60] sm:$0xff] %v1525_v30 }
 0x2a2   : > { %v950_v32 = vpop.f32.mrf.mxu1 }
 0x2a3   : > { %v951_v35 = vadd.f32 %v2397_v53, %v950_v32 }
 0x2a4   : > { %v1238_v36 = vpop.f32.mrf.mxu2 }
 0x2a5   : > { %v1037_v39 = vmax.f32 %v951_v35, 0.0  ;;  %v1239_v40 = vadd.f32 %v2264_v12, %v1238_v36 }
 0x2a6   : > { %v1526_v41 = vpop.f32.mrf.mxu3 }
 0x2a7   : > { %v1076_v43 = vpack.c.bf16 %v1037_v39, %v1036_v37  ;;  %v1352_v44 = vmax.f32 %v1239_v40, 0.0  ;;  %v1527_v45 = vadd.f32 %v2339_v16, %v1526_v41 }
 0x2a9   : > { %1667 = vst [vmem:[%s2346_s26 + $0x68] sm:$0xff] %v1527_v45  ;;  %1280 = vmatmul.bf16.gmra.mxu2 %v1076_v43  ;;  %v1400_v46 = vpack.c.bf16 %v1352_v44, %v1351_v42 }
 0x2aa   : > { %v953_v55 = vpop.f32.mrf.mxu1 }
 0x2ab   : > { %1568 = vmatmul.bf16.gmra.mxu3 %v1400_v46  ;;  %v954_v50 = vadd.f32 %v2397_v53, %v953_v55 }
 0x2ac   : > { %v1241_v47 = vpop.f32.mrf.mxu2 }
 0x2ad   : > { %v1242_v52 = vadd.f32 %v2264_v12, %v1241_v47  ;;  %v1038_v57 = vmax.f32 %v954_v50, 0.0 }
 0x2ae   : > { %v1529_v48 = vpop.f32.mrf.mxu3 }
 0x2af   : > { %v1530_v49 = vadd.f32 %v2339_v16, %v1529_v48  ;;  %v1353_v61 = vmax.f32 %v1242_v52, 0.0 }
 0x2b1   : > { %1668 = vst [vmem:[%s2346_s26 + $0x70] sm:$0xff] %v1530_v49 }
 0x2b2   : > { %v955_v51 = vpop.f32.mrf.mxu1 }
 0x2b3   : > { %v956_v54 = vadd.f32 %v2397_v53, %v955_v51 }
 0x2b4   : > { %v1243_v56 = vpop.f32.mrf.mxu2 }
 0x2b5   : > { %v1039_v58 = vmax.f32 %v956_v54, 0.0  ;;  %v1244_v59 = vadd.f32 %v2264_v12, %v1243_v56 }
 0x2b6   : > { %v1531_v60 = vpop.f32.mrf.mxu3 }
 0x2b7   : > { %v1077_v62 = vpack.c.bf16 %v1039_v58, %v1038_v57  ;;  %v1354_v63 = vmax.f32 %v1244_v59, 0.0  ;;  %v1532_v0 = vadd.f32 %v2339_v16, %v1531_v60 }
 0x2b9   : > { %1669 = vst [vmem:[%s2346_s26 + $0x78] sm:$0xff] %v1532_v0  ;;  %1285 = vmatmul.bf16.gmra.mxu2 %v1077_v62  ;;  %v1401_v1 = vpack.c.bf16 %v1354_v63, %v1353_v61 }
 0x2ba   : > { %v958_v2 = vpop.f32.mrf.mxu1 }
 0x2bb   : > { %1573 = vmatmul.bf16.gmra.mxu3 %v1401_v1  ;;  %v959_v6 = vadd.f32 %v2397_v53, %v958_v2 }
 0x2bc   : > { %v1246_v3 = vpop.f32.mrf.mxu2 }
 0x2bd   : > { %v1247_v8 = vadd.f32 %v2264_v12, %v1246_v3  ;;  %v1040_v11 = vmax.f32 %v959_v6, 0.0 }
 0x2be   : > { %v1534_v4 = vpop.f32.mrf.mxu3 }
 0x2bf   : > { %v1535_v5 = vadd.f32 %v2339_v16, %v1534_v4  ;;  %v1355_v17 = vmax.f32 %v1247_v8, 0.0 }
 0x2c1   : > { %1670 = vst [vmem:[%s2346_s26 + $0x80] sm:$0xff] %v1535_v5 }
 0x2c2   : > { %v960_v7 = vpop.f32.mrf.mxu1 }
 0x2c3   : > { %v961_v9 = vadd.f32 %v2397_v53, %v960_v7 }
 0x2c4   : > { %v1248_v10 = vpop.f32.mrf.mxu2 }
 0x2c5   : > { %v1041_v13 = vmax.f32 %v961_v9, 0.0  ;;  %v1249_v14 = vadd.f32 %v2264_v12, %v1248_v10 }
 0x2c6   : > { %v1536_v15 = vpop.f32.mrf.mxu3 }
 0x2c7   : > { %v1078_v38 = vpack.c.bf16 %v1041_v13, %v1040_v11  ;;  %v1356_v34 = vmax.f32 %v1249_v14, 0.0  ;;  %v1537_v18 = vadd.f32 %v2339_v16, %v1536_v15 }
 0x2c9   : > { %1671 = vst [vmem:[%s2346_s26 + $0x88] sm:$0xff] %v1537_v18  ;;  %1290 = vmatmul.bf16.gmra.mxu2 %v1078_v38  ;;  %v1402_v19 = vpack.c.bf16 %v1356_v34, %v1355_v17  ;;  %v2470_v18 = vld [vmem:[%s2584_s6] ss:$0 sm:$0xff] }
 0x2ca   : > { %v963_v20 = vpop.f32.mrf.mxu1 }
 0x2cb   : > { %1578 = vmatmul.bf16.gmra.mxu3 %v1402_v19  ;;  %v964_v24 = vadd.f32 %v2397_v53, %v963_v20 }
 0x2cc   : > { %v1251_v21 = vpop.f32.mrf.mxu2 }
 0x2cd   : > { %v1252_v26 = vadd.f32 %v2264_v12, %v1251_v21  ;;  %v1042_v29 = vmax.f32 %v964_v24, 0.0 }
 0x2ce   : > { %v1539_v22 = vpop.f32.mrf.mxu3 }
 0x2cf   : > { %v1540_v23 = vadd.f32 %v2339_v16, %v1539_v22  ;;  %v1357_v33 = vmax.f32 %v1252_v26, 0.0 }
 0x2d1   : > { %1672 = vst [vmem:[%s2346_s26 + $0x90] sm:$0xff] %v1540_v23 }
 0x2d2   : > { %v965_v25 = vpop.f32.mrf.mxu1 }
 0x2d3   : > { %v966_v27 = vadd.f32 %v2397_v53, %v965_v25 }
 0x2d4   : > { %v1253_v28 = vpop.f32.mrf.mxu2 }
 0x2d5   : > { %v1043_v30 = vmax.f32 %v966_v27, 0.0  ;;  %v1254_v31 = vadd.f32 %v2264_v12, %v1253_v28 }
 0x2d6   : > { %v1541_v32 = vpop.f32.mrf.mxu3 }
 0x2d7   : > { %v1079_v35 = vpack.c.bf16 %v1043_v30, %v1042_v29  ;;  %v1358_v36 = vmax.f32 %v1254_v31, 0.0  ;;  %v1542_v37 = vadd.f32 %v2339_v16, %v1541_v32 }
 0x2d9   : > { %1673 = vst [vmem:[%s2346_s26 + $0x98] sm:$0xff] %v1542_v37  ;;  %1295 = vmatmul.bf16.gmra.mxu2 %v1079_v35  ;;  %v1403_v39 = vpack.c.bf16 %v1358_v36, %v1357_v33 }
 0x2da   : > { %v968_v40 = vpop.f32.mrf.mxu1 }
 0x2db   : > { %1583 = vmatmul.bf16.gmra.mxu3 %v1403_v39  ;;  %v969_v44 = vadd.f32 %v2397_v53, %v968_v40 }
 0x2dc   : > { %v1256_v41 = vpop.f32.mrf.mxu2 }
 0x2dd   : > { %v1257_v46 = vadd.f32 %v2264_v12, %v1256_v41  ;;  %v1044_v48 = vmax.f32 %v969_v44, 0.0 }
 0x2de   : > { %v1544_v42 = vpop.f32.mrf.mxu3 }
 0x2df   : > { %v1545_v43 = vadd.f32 %v2339_v16, %v1544_v42  ;;  %v1359_v52 = vmax.f32 %v1257_v46, 0.0 }
 0x2e1   : > { %1674 = vst [vmem:[%s2346_s26 + $0xa0] sm:$0xff] %v1545_v43 }
 0x2e2   : > { %v970_v45 = vpop.f32.mrf.mxu1 }
 0x2e3   : > { %v971_v55 = vadd.f32 %v2397_v53, %v970_v45 }
 0x2e4   : > { %v1258_v47 = vpop.f32.mrf.mxu2 }
 0x2e5   : > { %v1045_v49 = vmax.f32 %v971_v55, 0.0  ;;  %v1259_v50 = vadd.f32 %v2264_v12, %v1258_v47 }
 0x2e6   : > { %v1546_v51 = vpop.f32.mrf.mxu3 }
 0x2e7   : > { %v1080_v54 = vpack.c.bf16 %v1045_v49, %v1044_v48  ;;  %v1360_v56 = vmax.f32 %v1259_v50, 0.0  ;;  %v1547_v57 = vadd.f32 %v2339_v16, %v1546_v51 }
 0x2e9   : > { %1675 = vst [vmem:[%s2346_s26 + $0xa8] sm:$0xff] %v1547_v57  ;;  %1300 = vmatmul.bf16.gmra.mxu2 %v1080_v54  ;;  %v1404_v58 = vpack.c.bf16 %v1360_v56, %v1359_v52 }
 0x2ea   : > { %v973_v59 = vpop.f32.mrf.mxu1 }
 0x2eb   : > { %1588 = vmatmul.bf16.gmra.mxu3 %v1404_v58  ;;  %v974_v63 = vadd.f32 %v2397_v53, %v973_v59 }
 0x2ec   : > { %v1261_v60 = vpop.f32.mrf.mxu2 }
 0x2ed   : > { %v1262_v1 = vadd.f32 %v2264_v12, %v1261_v60  ;;  %v1046_v4 = vmax.f32 %v974_v63, 0.0 }
 0x2ee   : > { %v1549_v61 = vpop.f32.mrf.mxu3 }
 0x2ef   : > { %v1550_v62 = vadd.f32 %v2339_v16, %v1549_v61  ;;  %v1361_v8 = vmax.f32 %v1262_v1, 0.0 }
 0x2f1   : > { %1676 = vst [vmem:[%s2346_s26 + $0xb0] sm:$0xff] %v1550_v62 }
 0x2f2   : > { %v975_v0 = vpop.f32.mrf.mxu1 }
 0x2f3   : > { %v976_v2 = vadd.f32 %v2397_v53, %v975_v0 }
 0x2f4   : > { %v1263_v3 = vpop.f32.mrf.mxu2 }
 0x2f5   : > { %v1047_v5 = vmax.f32 %v976_v2, 0.0  ;;  %v1264_v6 = vadd.f32 %v2264_v12, %v1263_v3 }
 0x2f6   : > { %v1551_v7 = vpop.f32.mrf.mxu3 }
 0x2f7   : > { %v1081_v9 = vpack.c.bf16 %v1047_v5, %v1046_v4  ;;  %v1362_v10 = vmax.f32 %v1264_v6, 0.0  ;;  %v1552_v11 = vadd.f32 %v2339_v16, %v1551_v7 }
 0x2f9   : > { %v1405_v13 = vpack.c.bf16 %v1362_v10, %v1361_v8  ;;  %1677 = vst [vmem:[%s2346_s26 + $0xb8] sm:$0xff] %v1552_v11  ;;  %1305 = vmatmul.bf16.gmra.mxu2 %v1081_v9 }
 0x2fa   : > { %v978_v14 = vpop.f32.mrf.mxu1 }
 0x2fb   : > { %1593 = vmatmul.bf16.gmra.mxu3 %v1405_v13  ;;  %v979_v34 = vadd.f32 %v2397_v53, %v978_v14 }
 0x2fc   : > { %v1266_v15 = vpop.f32.mrf.mxu2 }
 0x2fd   : > { %v1267_v19 = vadd.f32 %v2470_v18, %v1266_v15  ;;  %v1048_v22 = vmax.f32 %v979_v34, 0.0 }
 0x2fe   : > { %v1554_v17 = vpop.f32.mrf.mxu3 }
 0x2ff   : > { %v1555_v38 = vadd.f32 %v2339_v16, %v1554_v17  ;;  %v1363_v26 = vmax.f32 %v1267_v19, 0.0 }
 0x301   : > { %1678 = vst [vmem:[%s2346_s26 + $0xc0] sm:$0xff] %v1555_v38 }
 0x302   : > { %v980_v12 = vpop.f32.mrf.mxu1 }
 0x303   : > { %v981_v20 = vadd.f32 %v2397_v53, %v980_v12 }
 0x304   : > { %v1268_v21 = vpop.f32.mrf.mxu2 }
 0x305   : > { %v1049_v23 = vmax.f32 %v981_v20, 0.0  ;;  %v1269_v24 = vadd.f32 %v2470_v18, %v1268_v21 }
 0x306   : > { %v1556_v25 = vpop.f32.mrf.mxu3 }
 0x307   : > { %v1082_v27 = vpack.c.bf16 %v1049_v23, %v1048_v22  ;;  %v1364_v28 = vmax.f32 %v1269_v24, 0.0  ;;  %v1557_v29 = vadd.f32 %v2339_v16, %v1556_v25 }
 0x309   : > { %v1406_v30 = vpack.c.bf16 %v1364_v28, %v1363_v26  ;;  %1679 = vst [vmem:[%s2346_s26 + $0xc8] sm:$0xff] %v1557_v29  ;;  %1310 = vmatmul.bf16.gmra.mxu2 %v1082_v27 }
 0x30a   : > { %v983_v31 = vpop.f32.mrf.mxu1 }
 0x30b   : > { %1598 = vmatmul.bf16.gmra.mxu3 %v1406_v30  ;;  %v984_v36 = vadd.f32 %v2397_v53, %v983_v31 }
 0x30c   : > { %v1271_v32 = vpop.f32.mrf.mxu2 }
 0x30d   : > { %v1272_v39 = vadd.f32 %v2470_v18, %v1271_v32  ;;  %v1050_v42 = vmax.f32 %v984_v36, 0.0 }
 0x30e   : > { %v1559_v33 = vpop.f32.mrf.mxu3 }
 0x30f   : > { %v1560_v35 = vadd.f32 %v2339_v16, %v1559_v33  ;;  %v1365_v46 = vmax.f32 %v1272_v39, 0.0 }
 0x311   : > { %1680 = vst [vmem:[%s2346_s26 + $0xd0] sm:$0xff] %v1560_v35 }
 0x312   : > { %v985_v37 = vpop.f32.mrf.mxu1 }
 0x313   : > { %v986_v40 = vadd.f32 %v2397_v53, %v985_v37 }
 0x314   : > { %v1273_v41 = vpop.f32.mrf.mxu2 }
 0x315   : > { %v1051_v43 = vmax.f32 %v986_v40, 0.0  ;;  %v1274_v44 = vadd.f32 %v2470_v18, %v1273_v41 }
 0x316   : > { %v1561_v45 = vpop.f32.mrf.mxu3 }
 0x317   : > { %v1083_v55 = vpack.c.bf16 %v1051_v43, %v1050_v42  ;;  %v1366_v47 = vmax.f32 %v1274_v44, 0.0  ;;  %v1562_v48 = vadd.f32 %v2339_v16, %v1561_v45 }
 0x319   : > { %v1407_v49 = vpack.c.bf16 %v1366_v47, %v1365_v46  ;;  %1681 = vst [vmem:[%s2346_s26 + $0xd8] sm:$0xff] %v1562_v48  ;;  %1315 = vmatmul.bf16.gmra.mxu2 %v1083_v55 }
 0x31b   : > { %1603 = vmatmul.bf16.gmra.mxu3 %v1407_v49 }
 0x31c   : > { %v1276_v50 = vpop.f32.mrf.mxu2 }
 0x31d   : > { %v1277_v52 = vadd.f32 %v2470_v18, %v1276_v50 }
 0x31e   : > { %v1564_v51 = vpop.f32.mrf.mxu3 }
 0x31f   : > { %v1565_v53 = vadd.f32 %v2339_v16, %v1564_v51  ;;  %v1367_v58 = vmax.f32 %v1277_v52, 0.0 }
 0x321   : > { %1682 = vst [vmem:[%s2346_s26 + $0xe0] sm:$0xff] %v1565_v53 }
 0x324   : > { %v1278_v54 = vpop.f32.mrf.mxu2 }
 0x325   : > { %v1279_v56 = vadd.f32 %v2470_v18, %v1278_v54 }
 0x326   : > { %v1566_v57 = vpop.f32.mrf.mxu3 }
 0x327   : > { %v1368_v59 = vmax.f32 %v1279_v56, 0.0  ;;  %v1567_v60 = vadd.f32 %v2339_v16, %v1566_v57 }
 0x329   : > { %v1408_v61 = vpack.c.bf16 %v1368_v59, %v1367_v58  ;;  %1683 = vst [vmem:[%s2346_s26 + $0xe8] sm:$0xff] %v1567_v60 }
 0x32b   : > { %1608 = vmatmul.bf16.gmra.mxu3 %v1408_v61 }
 0x32c   : > { %v1281_v62 = vpop.f32.mrf.mxu2 }
 0x32d   : > { %v1282_v1 = vadd.f32 %v2470_v18, %v1281_v62 }
 0x32e   : > { %v1569_v63 = vpop.f32.mrf.mxu3 }
 0x32f   : > { %v1570_v0 = vadd.f32 %v2339_v16, %v1569_v63  ;;  %v1369_v5 = vmax.f32 %v1282_v1, 0.0 }
 0x331   : > { %1684 = vst [vmem:[%s2346_s26 + $0xf0] sm:$0xff] %v1570_v0 }
 0x334   : > { %v1283_v2 = vpop.f32.mrf.mxu2 }
 0x335   : > { %v1284_v3 = vadd.f32 %v2470_v18, %v1283_v2 }
 0x336   : > { %v1571_v4 = vpop.f32.mrf.mxu3 }
 0x337   : > { %v1370_v6 = vmax.f32 %v1284_v3, 0.0  ;;  %v1572_v7 = vadd.f32 %v2339_v16, %v1571_v4 }
 0x339   : > { %v1409_v8 = vpack.c.bf16 %v1370_v6, %v1369_v5  ;;  %1685 = vst [vmem:[%s2346_s26 + $0xf8] sm:$0xff] %v1572_v7 }
 0x33b   : > { %1613 = vmatmul.bf16.gmra.mxu3 %v1409_v8 }
 0x33c   : > { %v1286_v9 = vpop.f32.mrf.mxu2 }
 0x33d   : > { %v1287_v13 = vadd.f32 %v2470_v18, %v1286_v9 }
 0x33e   : > { %v1574_v10 = vpop.f32.mrf.mxu3 }
 0x33f   : > { %v1575_v11 = vadd.f32 %v2339_v16, %v1574_v10  ;;  %v1371_v38 = vmax.f32 %v1287_v13, 0.0 }
 0x341   : > { %1686 = vst [vmem:[%s2346_s26 + $0x100] sm:$0xff] %v1575_v11 }
 0x344   : > { %v1288_v14 = vpop.f32.mrf.mxu2 }
 0x345   : > { %v1289_v15 = vadd.f32 %v2470_v18, %v1288_v14 }
 0x346   : > { %v1576_v17 = vpop.f32.mrf.mxu3 }
 0x347   : > { %v1372_v34 = vmax.f32 %v1289_v15, 0.0  ;;  %v1577_v12 = vadd.f32 %v2339_v16, %v1576_v17 }
 0x349   : > { %v1410_v19 = vpack.c.bf16 %v1372_v34, %v1371_v38  ;;  %1687 = vst [vmem:[%s2346_s26 + $0x108] sm:$0xff] %v1577_v12 }
 0x34b   : > { %1618 = vmatmul.bf16.gmra.mxu3 %v1410_v19 }
 0x34c   : > { %v1291_v20 = vpop.f32.mrf.mxu2 }
 0x34d   : > { %v1292_v23 = vadd.f32 %v2470_v18, %v1291_v20 }
 0x34e   : > { %v1579_v21 = vpop.f32.mrf.mxu3 }
 0x34f   : > { %v1580_v22 = vadd.f32 %v2339_v16, %v1579_v21  ;;  %v1373_v27 = vmax.f32 %v1292_v23, 0.0 }
 0x351   : > { %1688 = vst [vmem:[%s2346_s26 + $0x110] sm:$0xff] %v1580_v22 }
 0x354   : > { %v1293_v24 = vpop.f32.mrf.mxu2 }
 0x355   : > { %v1294_v25 = vadd.f32 %v2470_v18, %v1293_v24 }
 0x356   : > { %v1581_v26 = vpop.f32.mrf.mxu3 }
 0x357   : > { %v1374_v28 = vmax.f32 %v1294_v25, 0.0  ;;  %v1582_v29 = vadd.f32 %v2339_v16, %v1581_v26 }
 0x359   : > { %v1411_v30 = vpack.c.bf16 %v1374_v28, %v1373_v27  ;;  %1689 = vst [vmem:[%s2346_s26 + $0x118] sm:$0xff] %v1582_v29 }
 0x35b   : > { %1623 = vmatmul.bf16.gmra.mxu3 %v1411_v30 }
 0x35c   : > { %v1296_v31 = vpop.f32.mrf.mxu2 }
 0x35d   : > { %v1297_v35 = vadd.f32 %v2470_v18, %v1296_v31 }
 0x35e   : > { %v1584_v32 = vpop.f32.mrf.mxu3 }
 0x35f   : > { %v1585_v33 = vadd.f32 %v2339_v16, %v1584_v32  ;;  %v1375_v40 = vmax.f32 %v1297_v35, 0.0 }
 0x361   : > { %1690 = vst [vmem:[%s2346_s26 + $0x120] sm:$0xff] %v1585_v33 }
 0x364   : > { %v1298_v36 = vpop.f32.mrf.mxu2 }
 0x365   : > { %v1299_v37 = vadd.f32 %v2470_v18, %v1298_v36 }
 0x366   : > { %v1586_v39 = vpop.f32.mrf.mxu3 }
 0x367   : > { %v1376_v41 = vmax.f32 %v1299_v37, 0.0  ;;  %v1587_v42 = vadd.f32 %v2339_v16, %v1586_v39 }
 0x369   : > { %v1412_v43 = vpack.c.bf16 %v1376_v41, %v1375_v40  ;;  %1691 = vst [vmem:[%s2346_s26 + $0x128] sm:$0xff] %v1587_v42 }
 0x36b   : > { %1628 = vmatmul.bf16.gmra.mxu3 %v1412_v43 }
 0x36c   : > { %v1301_v44 = vpop.f32.mrf.mxu2 }
 0x36d   : > { %v1302_v55 = vadd.f32 %v2470_v18, %v1301_v44 }
 0x36e   : > { %v1589_v45 = vpop.f32.mrf.mxu3 }
 0x36f   : > { %v1590_v46 = vadd.f32 %v2339_v16, %v1589_v45  ;;  %v1377_v50 = vmax.f32 %v1302_v55, 0.0 }
 0x371   : > { %1692 = vst [vmem:[%s2346_s26 + $0x130] sm:$0xff] %v1590_v46 }
 0x374   : > { %v1303_v47 = vpop.f32.mrf.mxu2 }
 0x375   : > { %v1304_v48 = vadd.f32 %v2470_v18, %v1303_v47 }
 0x376   : > { %v1591_v49 = vpop.f32.mrf.mxu3 }
 0x377   : > { %v1378_v51 = vmax.f32 %v1304_v48, 0.0  ;;  %v1592_v53 = vadd.f32 %v2339_v16, %v1591_v49 }
 0x379   : > { %v1413_v52 = vpack.c.bf16 %v1378_v51, %v1377_v50  ;;  %1693 = vst [vmem:[%s2346_s26 + $0x138] sm:$0xff] %v1592_v53 }
 0x37b   : > { %1633 = vmatmul.bf16.gmra.mxu3 %v1413_v52 }
 0x37c   : > { %v1306_v54 = vpop.f32.mrf.mxu2 }
 0x37d   : > { %v1307_v58 = vadd.f32 %v2470_v18, %v1306_v54 }
 0x37e   : > { %v1594_v56 = vpop.f32.mrf.mxu3 }
 0x37f   : > { %v1595_v57 = vadd.f32 %v2339_v16, %v1594_v56  ;;  %v1379_v62 = vmax.f32 %v1307_v58, 0.0  ;;  %v1962_v56 = vld [vmem:[%s2586_s8] ss:$0 sm:$0xff] }
 0x381   : > { %1694 = vst [vmem:[%s2346_s26 + $0x140] sm:$0xff] %v1595_v57 }
 0x384   : > { %v1308_v59 = vpop.f32.mrf.mxu2 }
 0x385   : > { %v1309_v60 = vadd.f32 %v2470_v18, %v1308_v59 }
 0x386   : > { %v1596_v61 = vpop.f32.mrf.mxu3 }
 0x387   : > { %v1380_v63 = vmax.f32 %v1309_v60, 0.0  ;;  %v1597_v0 = vadd.f32 %v2339_v16, %v1596_v61 }
 0x389   : > { %v1414_v1 = vpack.c.bf16 %v1380_v63, %v1379_v62  ;;  %1695 = vst [vmem:[%s2346_s26 + $0x148] sm:$0xff] %v1597_v0 }
 0x38b   : > { %1638 = vmatmul.bf16.gmra.mxu3 %v1414_v1 }
 0x38c   : > { %v1311_v2 = vpop.f32.mrf.mxu2 }
 0x38d   : > { %v1312_v5 = vadd.f32 %v2470_v18, %v1311_v2 }
 0x38e   : > { %v1599_v3 = vpop.f32.mrf.mxu3 }
 0x38f   : > { %v1600_v4 = vadd.f32 %v2339_v16, %v1599_v3  ;;  %v1381_v9 = vmax.f32 %v1312_v5, 0.0 }
 0x391   : > { %1696 = vst [vmem:[%s2346_s26 + $0x150] sm:$0xff] %v1600_v4 }
 0x394   : > { %v1313_v6 = vpop.f32.mrf.mxu2 }
 0x395   : > { %v1314_v7 = vadd.f32 %v2470_v18, %v1313_v6 }
 0x396   : > { %v1601_v8 = vpop.f32.mrf.mxu3 }
 0x397   : > { %v1382_v10 = vmax.f32 %v1314_v7, 0.0  ;;  %v1602_v11 = vadd.f32 %v2339_v16, %v1601_v8 }
 0x399   : > { %v1415_v13 = vpack.c.bf16 %v1382_v10, %v1381_v9  ;;  %1697 = vst [vmem:[%s2346_s26 + $0x158] sm:$0xff] %v1602_v11 }
 0x39b   : > { %1643 = vmatmul.bf16.gmra.mxu3 %v1415_v13 }
 0x39c   : > { %v1316_v14 = vpop.f32.mrf.mxu2 }
 0x39d   : > { %v1317_v38 = vadd.f32 %v2470_v18, %v1316_v14 }
 0x39e   : > { %v1604_v15 = vpop.f32.mrf.mxu3 }
 0x39f   : > { %v1605_v17 = vadd.f32 %v2339_v16, %v1604_v15  ;;  %v1383_v20 = vmax.f32 %v1317_v38, 0.0 }
 0x3a1   : > { %1698 = vst [vmem:[%s2346_s26 + $0x160] sm:$0xff] %v1605_v17 }
 0x3a4   : > { %v1318_v34 = vpop.f32.mrf.mxu2 }
 0x3a5   : > { %v1319_v12 = vadd.f32 %v2470_v18, %v1318_v34 }
 0x3a6   : > { %v1606_v19 = vpop.f32.mrf.mxu3 }
 0x3a7   : > { %v1384_v21 = vmax.f32 %v1319_v12, 0.0  ;;  %v1607_v22 = vadd.f32 %v2339_v16, %v1606_v19 }
 0x3a9   : > { %v1416_v23 = vpack.c.bf16 %v1384_v21, %v1383_v20  ;;  %1699 = vst [vmem:[%s2346_s26 + $0x168] sm:$0xff] %v1607_v22 }
 0x3ab   : > { %1648 = vmatmul.bf16.gmra.mxu3 %v1416_v23 }
 0x3ae   : > { %v1609_v24 = vpop.f32.mrf.mxu3 }
 0x3af   : > { %v1610_v25 = vadd.f32 %v2339_v16, %v1609_v24 }
 0x3b1   : > { %1700 = vst [vmem:[%s2346_s26 + $0x170] sm:$0xff] %v1610_v25 }
 0x3b6   : > { %v1611_v26 = vpop.f32.mrf.mxu3 }
 0x3b7   : > { %v1612_v27 = vadd.f32 %v2339_v16, %v1611_v26 }
 0x3b9   : > { %1701 = vst [vmem:[%s2346_s26 + $0x178] sm:$0xff] %v1612_v27 }
 0x3be   : > { %v1614_v18 = vpop.f32.mrf.mxu3 }
 0x3bf   : > { %v1615_v28 = vadd.f32 %v2339_v16, %v1614_v18 }
 0x3c1   : > { %1702 = vst [vmem:[%s2346_s26 + $0x180] sm:$0xff] %v1615_v28 }
 0x3c6   : > { %v1616_v29 = vpop.f32.mrf.mxu3 }
 0x3c7   : > { %v1617_v30 = vadd.f32 %v2339_v16, %v1616_v29 }
 0x3c9   : > { %1703 = vst [vmem:[%s2346_s26 + $0x188] sm:$0xff] %v1617_v30 }
 0x3ce   : > { %v1619_v31 = vpop.f32.mrf.mxu3 }
 0x3cf   : > { %v1620_v32 = vadd.f32 %v2339_v16, %v1619_v31 }
 0x3d1   : > { %1704 = vst [vmem:[%s2346_s26 + $0x190] sm:$0xff] %v1620_v32 }
 0x3d6   : > { %v1621_v33 = vpop.f32.mrf.mxu3 }
 0x3d7   : > { %v1622_v35 = vadd.f32 %v2339_v16, %v1621_v33 }
 0x3d9   : > { %1705 = vst [vmem:[%s2346_s26 + $0x198] sm:$0xff] %v1622_v35 }
 0x3de   : > { %v1624_v36 = vpop.f32.mrf.mxu3 }
 0x3df   : > { %v1625_v37 = vadd.f32 %v2339_v16, %v1624_v36 }
 0x3e1   : > { %1706 = vst [vmem:[%s2346_s26 + $0x1a0] sm:$0xff] %v1625_v37 }
 0x3e6   : > { %v1626_v39 = vpop.f32.mrf.mxu3 }
 0x3e7   : > { %v1627_v40 = vadd.f32 %v2339_v16, %v1626_v39 }
 0x3e9   : > { %1707 = vst [vmem:[%s2346_s26 + $0x1a8] sm:$0xff] %v1627_v40 }
 0x3ee   : > { %v1629_v41 = vpop.f32.mrf.mxu3 }
 0x3ef   : > { %v1630_v42 = vadd.f32 %v2339_v16, %v1629_v41 }
 0x3f1   : > { %1708 = vst [vmem:[%s2346_s26 + $0x1b0] sm:$0xff] %v1630_v42 }
 0x3f6   : > { %v1631_v43 = vpop.f32.mrf.mxu3 }
 0x3f7   : > { %v1632_v44 = vadd.f32 %v2339_v16, %v1631_v43 }
 0x3f9   : > { %1709 = vst [vmem:[%s2346_s26 + $0x1b8] sm:$0xff] %v1632_v44 }
 0x3fe   : > { %v1634_v45 = vpop.f32.mrf.mxu3 }
 0x3ff   : > { %v1635_v46 = vadd.f32 %v2339_v16, %v1634_v45 }
 0x401   : > { %1710 = vst [vmem:[%s2346_s26 + $0x1c0] sm:$0xff] %v1635_v46 }
 0x406   : > { %v1636_v55 = vpop.f32.mrf.mxu3 }
 0x407   : > { %v1637_v47 = vadd.f32 %v2339_v16, %v1636_v55 }
 0x409   : > { %1711 = vst [vmem:[%s2346_s26 + $0x1c8] sm:$0xff] %v1637_v47 }
 0x40e   : > { %v1639_v48 = vpop.f32.mrf.mxu3 }
 0x40f   : > { %v1640_v49 = vadd.f32 %v2339_v16, %v1639_v48 }
 0x411   : > { %1712 = vst [vmem:[%s2346_s26 + $0x1d0] sm:$0xff] %v1640_v49 }
 0x416   : > { %v1641_v50 = vpop.f32.mrf.mxu3 }
 0x417   : > { %v1642_v51 = vadd.f32 %v2339_v16, %v1641_v50 }
 0x419   : > { %1713 = vst [vmem:[%s2346_s26 + $0x1d8] sm:$0xff] %v1642_v51 }
 0x41e   : > { %v1644_v53 = vpop.f32.mrf.mxu3 }
 0x41f   : > { %v1645_v52 = vadd.f32 %v2339_v16, %v1644_v53 }
 0x421   : > { %1714 = vst [vmem:[%s2346_s26 + $0x1e0] sm:$0xff] %v1645_v52 }
 0x426   : > { %v1646_v54 = vpop.f32.mrf.mxu3 }
 0x427   : > { %v1647_v57 = vadd.f32 %v1962_v56, %v1646_v54 }
 0x429   : > { %1715 = vst [vmem:[%s2346_s26 + $0x1e8] sm:$0xff] %v1647_v57 }
 0x42e   : > { %v1649_v58 = vpop.f32.mrf.mxu3 }
 0x42f   : > { %v1650_v59 = vadd.f32 %v1962_v56, %v1649_v58 }
 0x431   : > { %1716 = vst [vmem:[%s2346_s26 + $0x1f0] sm:$0xff] %v1650_v59 }
 0x436   : > { %v1651_v60 = vpop.f32.mrf.mxu3 }
 0x437   : > { %v1652_v61 = vadd.f32 %v1962_v56, %v1651_v60 }
 0x439   : > { %1717 = vst [vmem:[%s2346_s26 + $0x1f8] sm:$0xff] %v1652_v61 }
 0x43a PF: > { %s19_s30 = sadd.s32 1, %s1969_s30  }
 0x43b   : > { %p16_p4 = scmp.ge.s32.totalorder %s19_s30, 4  }
 0x43d   :  { %18 = sbr.rel (!%p16_p4) target bundleno = 1 (0x1), region = 86 }

</bundles_post_ra>
